<compile_context>
chip_gen: v5e
topology: v5e:2x2
jax: 0.10.0
libtpu: 0.0.40
codegen_flags: <defaults>
</compile_context>

<pallas_src>
import math

import jax
import jax.numpy as jnp
from jax import lax
from jax.experimental import pallas as pl
from jax.experimental.pallas import tpu as pltpu


def _split_channels(channels, num_groups):
    split = [channels // num_groups for _ in range(num_groups)]
    split[0] += channels - sum(split)
    return split


def _round_row_width(w_min, h_out, max_bump=32):
    """Round the accumulator row width so h_out*W_ph is a multiple of 128 (lane-dense
    output stores) whenever that only costs a few junk columns."""
    g = math.gcd(h_out, 128)
    m = 128 // g
    if m <= max_bump:
        return ((w_min + m - 1) // m) * m
    return w_min


def _make_blaze_kernel(splits, ksizes, stride, p_max, w_ph, h_out, c_out,
                       batch_tile, use_mxu):
    """Fused MDConv + folded-BN + 1x1 conv + ReLU kernel body.

    Ref layout (all spatial axes already flattened to the lane dim by the wrapper):
      x_ref    : (bt, s*s, c_in, H_ph*W_ph)   phase-decomposed, halo-padded input
      dw_ref_g : (k_g*k_g, c_g, 1)            BN1-folded depthwise taps (per group)
      pw_ref   : (c_mid, c_out, 1)            BN2-folded pointwise weights  [VPU path]
                 (c_out, c_mid)                                             [MXU path]
      pwb_ref  : (c_out, 1)                   fully folded bias
      out_ref  : (bt, c_out, h_out*W_ph)      lane-dense output block
    """
    num_groups = len(splits)
    s = stride
    L = h_out * w_ph
    bt = batch_tile

    def kernel(*refs):
        x_ref = refs[0]
        dw_refs = refs[1:1 + num_groups]
        pw_ref = refs[1 + num_groups]
        pwb_ref = refs[2 + num_groups]
        out_ref = refs[3 + num_groups]

        # Pointwise accumulator: c_out on sublanes, flattened spatial on lanes.
        z = jnp.zeros((bt, c_out, L), jnp.float32)

        cs = 0  # first input/mid channel of the current group
        for g in range(num_groups):
            k = ksizes[g]
            cg = splits[g]
            p = k // 2
            dw_ref = dw_refs[g]

            # ---- depthwise conv: one FMA per tap covers all cg channels ------------
            acc = jnp.zeros((bt, cg, L), jnp.float32)
            for kh in range(k):
                a_full = kh + p_max - p                # row offset in the padded frame
                for kw in range(k):
                    b_full = kw + p_max - p            # col offset in the padded frame
                    ph = (a_full % s) * s + (b_full % s)
                    off = (a_full // s) * w_ph + (b_full // s)
                    # Contiguous constant-offset lane slice — no masks, no relayout.
                    tap = x_ref[:, ph, cs:cs + cg, off:off + L]
                    wv = dw_ref[kh * k + kw]           # (cg, 1), BN1 folded
                    acc = acc + tap * wv[None, :, :]   # VPU FMA over all cg channels

            # ---- fuse the 1x1 conv (+BN2) for this group into z --------------------
            if use_mxu:
                pw_g = pw_ref[:, cs:cs + cg]           # (c_out, cg)
                zg = jnp.stack(
                    [jnp.dot(pw_g, acc[b], preferred_element_type=jnp.float32)
                     for b in range(bt)], axis=0)
                z = z + zg
            else:
                # Tiny channel counts: MXU would be ~0% utilized; unrolled VPU FMAs.
                for c in range(cg):
                    yc = acc[:, c:c + 1, :]            # (bt, 1, L)
                    wc = pw_ref[cs + c]                # (c_out, 1)
                    z = z + yc * wc[None, :, :]        # broadcast FMA
            cs += cg

        z = z + pwb_ref[...][None, :, :]                           # folded bias
        out_ref[...] = jnp.maximum(z, 0.0).astype(out_ref.dtype)   # ReLU, dense store

    return kernel


def blaze_block_forward(x_nchw, params, kernel_size, stride, batch_tile=None,
                        block_vmem_budget_bytes=40 << 20, use_mxu=None):
    """BlazeBlock forward. Input/output are NCHW (PyTorch convention)."""
    splits = list(params["splits"])
    dw_ws = params["dw_weights"]     # list of (k, k, c_g)
    bn1 = params["bn1"]              # (2, c_mid): row0 = scale, row1 = bias
    pw_w = params["pw_w"]            # (c_mid, c_out)
    pw_b = params["pw_b"]            # (1, c_out)
    bn2 = params["bn2"]              # (2, c_out)

    s = int(stride)
    assert s in (1, 2)
    ksizes = tuple(int(k) for k in kernel_size)
    assert all(k % 2 == 1 for k in ksizes), "odd kernel sizes expected"
    assert len(ksizes) == len(splits) and all(cg > 0 for cg in splits)

    x = x_nchw                        # keep caller dtype (bf16 transport stays bf16)
    n, c_in, h, w = x.shape
    c_mid, c_out = pw_w.shape
    assert c_mid == sum(splits) == c_in
    h_out = (h - 1) // s + 1
    w_out = (w - 1) // s + 1

    # ---- geometry of the lane-flat / polyphase layout --------------------------
    p_max = max(k // 2 for k in ksizes)
    D = (2 * p_max) // s                     # max per-phase row/col tap offset
    w_ph = _round_row_width(w_out + D, h_out)
    h_ph = h_out + D + 1                     # +1 row so tail tap slices stay in bounds
    L = h_out * w_ph                         # accumulator / output lane length
    PH = h_ph * w_ph                         # per-phase flattened input length
    n_phase = s * s

    # ---- Fold BN1 into the depthwise taps and BN2 into the pointwise conv ------
    sc1, bi1 = bn1[0], bn1[1]
    sc2, bi2 = bn2[0], bn2[1]
    dw_folded = []
    cs = 0
    for wg, cg, k in zip(dw_ws, splits, ksizes):
        wf = (wg.astype(jnp.float32) * sc1[cs:cs + cg][None, None, :])
        dw_folded.append(wf.reshape(k * k, cg, 1))           # taps outer, cg sublanes
        cs += cg
    pw_f = (pw_w * sc2[None, :]).astype(jnp.float32)          # (c_mid, c_out)
    if use_mxu is None:
        use_mxu = (c_mid >= 32 and c_out >= 32)               # real BlazeFace sizes
    pw_arg = pw_f.T if use_mxu else pw_f[:, :, None]
    pwb_f = ((pw_b[0] + bi1 @ pw_w) * sc2 + bi2).astype(jnp.float32)[:, None]

    # ---- pad once + polyphase decompose + flatten (DMA-layer work, done by XLA) -
    pad_h = (p_max, s * h_ph - h - p_max)
    pad_w = (p_max, s * w_ph - w - p_max)
    assert pad_h[1] >= 0 and pad_w[1] >= 0
    xp = jnp.pad(x, ((0, 0), (0, 0), pad_h, pad_w))
    xp = xp.reshape(n, c_in, h_ph, s, w_ph, s)
    xp = xp.transpose(0, 3, 5, 1, 2, 4)                       # (n, s, s, c, h_ph, w_ph)
    x_ph = xp.reshape(n, n_phase, c_in, PH)

    # ---- batch tile from a VMEM budget; guarantee >=2 grid steps when possible --
    out_dtype = x.dtype
    x_img_bytes = n_phase * c_in * PH * jnp.dtype(x.dtype).itemsize
    out_img_bytes = c_out * L * jnp.dtype(out_dtype).itemsize
    if batch_tile is None:
        bt = max(1, block_vmem_budget_bytes // (2 * (x_img_bytes + out_img_bytes)))
        if n >= 2:
            bt = min(bt, n // 2)              # >=2 steps: pipelining + v7x second TC
        bt = max(1, min(bt, n))
        while n % bt:
            bt -= 1
        batch_tile = int(bt)
    assert n % batch_tile == 0
    grid = (n // batch_tile,)

    step_bytes = batch_tile * (x_img_bytes + out_img_bytes)
    vmem_limit = int(max(32 << 20, min(128 << 20, 2 * step_bytes + (4 << 20))))

    kernel = _make_blaze_kernel(tuple(splits), ksizes, s, p_max, w_ph, h_out, c_out,
                                batch_tile, use_mxu)

    in_specs = [pl.BlockSpec((batch_tile, n_phase, c_in, PH), lambda i: (i, 0, 0, 0))]
    for k, cg in zip(ksizes, splits):
        in_specs.append(pl.BlockSpec((k * k, cg, 1), lambda i: (0, 0, 0)))
    if use_mxu:
        in_specs.append(pl.BlockSpec((c_out, c_mid), lambda i: (0, 0)))
    else:
        in_specs.append(pl.BlockSpec((c_mid, c_out, 1), lambda i: (0, 0, 0)))
    in_specs.append(pl.BlockSpec((c_out, 1), lambda i: (0, 0)))
    out_spec = pl.BlockSpec((batch_tile, c_out, L), lambda i: (i, 0, 0))

    out_flat = pl.pallas_call(
        kernel,
        grid=grid,
        in_specs=in_specs,
        out_specs=out_spec,
        out_shape=jax.ShapeDtypeStruct((n, c_out, L), out_dtype),
        compiler_params=pltpu.CompilerParams(
            dimension_semantics=("parallel",),
            vmem_limit_bytes=vmem_limit),
    )(x_ph, *dw_folded, pw_arg, pwb_f)

    # Strip the junk columns once (cheap XLA slice) and restore NCHW.
    out = out_flat.reshape(n, c_out, h_out, w_ph)[:, :, :, :w_out]
    return out


def init_blaze_params(key, in_channels, out_channels, kernel_size,
                      mid_channels=None, eps=1e-5):
    mid_channels = mid_channels or in_channels
    splits = _split_channels(in_channels, len(kernel_size))
    g = len(kernel_size)
    keys = jax.random.split(key, g + 4)

    dw_weights = []
    for i, (cg, k) in enumerate(zip(splits, kernel_size)):
        dw_weights.append(0.1 * jax.random.normal(keys[i], (k, k, cg), jnp.float32))

    def bn_params(bkey, c):
        k1, k2, k3, k4 = jax.random.split(bkey, 4)
        gamma = jax.random.uniform(k1, (c,), jnp.float32, 0.5, 1.5)
        beta = 0.1 * jax.random.normal(k2, (c,), jnp.float32)
        mean = 0.1 * jax.random.normal(k3, (c,), jnp.float32)
        var = jax.random.uniform(k4, (c,), jnp.float32, 0.5, 1.5)
        scale = gamma / jnp.sqrt(var + eps)
        bias = beta - mean * scale
        return jnp.stack([scale, bias], axis=0)      # (2, c)

    bn1 = bn_params(keys[g], mid_channels)
    pw_w = 0.1 * jax.random.normal(keys[g + 1], (mid_channels, out_channels), jnp.float32)
    pw_b = 0.1 * jax.random.normal(keys[g + 2], (1, out_channels), jnp.float32)
    bn2 = bn_params(keys[g + 3], out_channels)

    return {"splits": splits, "dw_weights": dw_weights, "bn1": bn1,
            "pw_w": pw_w, "pw_b": pw_b, "bn2": bn2}


def blaze_block_reference(x_nchw, params, kernel_size, stride):
    """Pure-JAX NCHW reference mirroring the PyTorch forward (eval-mode BN, unfused)."""
    splits = params["splits"]
    outs = []
    start = 0
    for cg, k, wg in zip(splits, kernel_size, params["dw_weights"]):
        xg = x_nchw[:, start:start + cg]
        wt = jnp.transpose(wg, (2, 0, 1))[:, None, :, :]      # (cg, 1, k, k) OIHW
        yg = lax.conv_general_dilated(
            xg, wt, (stride, stride), [(k // 2, k // 2)] * 2,
            dimension_numbers=("NCHW", "OIHW", "NCHW"),
            feature_group_count=cg)
        outs.append(yg)
        start += cg
    y = jnp.concatenate(outs, axis=1)
    s1, b1 = params["bn1"][0], params["bn1"][1]
    y = y * s1[None, :, None, None] + b1[None, :, None, None]
    z = jnp.einsum("nchw,co->nohw", y, params["pw_w"])
    z = z + params["pw_b"][0][None, :, None, None]
    s2, b2 = params["bn2"][0], params["bn2"][1]
    z = z * s2[None, :, None, None] + b2[None, :, None, None]
    return jnp.maximum(z, 0.0)


if __name__ == "__main__":
    key = jax.random.PRNGKey(0)
    k_x1, k_x2, k_p = jax.random.split(key, 3)

    in_channels, out_channels = 4, 8
    kernel_size = (3, 5)      # MDConv with two depthwise groups (3x3 and 5x5)

    params = init_blaze_params(k_p, in_channels, out_channels, kernel_size)

    # stride = 1
    x1 = jax.random.normal(k_x1, (2, in_channels, 16, 16), jnp.float32)   # NCHW
    out1 = jax.block_until_ready(blaze_block_forward(x1, params, kernel_size, stride=1))
    ref1 = blaze_block_reference(x1, params, kernel_size, 1)
    assert out1.shape == ref1.shape, (out1.shape, ref1.shape)
    if not jnp.allclose(out1, ref1, atol=1e-4, rtol=1e-4):
        raise AssertionError("Pallas BlazeBlock (stride=1) does not match reference")

    # stride = 2, odd spatial size exercises the polyphase / ceil-output path
    x2 = jax.random.normal(k_x2, (2, in_channels, 15, 15), jnp.float32)
    out2 = jax.block_until_ready(blaze_block_forward(x2, params, kernel_size, stride=2))
    ref2 = blaze_block_reference(x2, params, kernel_size, 2)
    assert out2.shape == ref2.shape, (out2.shape, ref2.shape)
    if not jnp.allclose(out2, ref2, atol=1e-4, rtol=1e-4):
        raise AssertionError("Pallas BlazeBlock (stride=2) does not match reference")

    print("KERNEL_OK")
</pallas_src>

<mosaic_0001>
module attributes {stable_mosaic.version = 11 : i64} {
  func.func @kernel(%arg0: i32, %arg1: memref<1x1x4x504xf32, #tpu.memory_space<vmem>>, %arg2: memref<9x2x1xf32, #tpu.memory_space<vmem>>, %arg3: memref<25x2x1xf32, #tpu.memory_space<vmem>>, %arg4: memref<4x8x1xf32, #tpu.memory_space<vmem>>, %arg5: memref<8x1xf32, #tpu.memory_space<vmem>>, %arg6: memref<1x8x384xf32, #tpu.memory_space<vmem>>) attributes {dimension_semantics = [#tpu.dimension_semantics<parallel>], iteration_bounds = array<i64: 2>, scalar_prefetch = 0 : i64, scratch_operands = 0 : i64, tpu.core_type = #tpu.core_type<tc>, window_params = [{transform_indices = @transform_0, window_bounds = array<i64: 1, 1, 4, 504>}, {pipeline_mode = #tpu.pipeline_mode<synchronous>, transform_indices = @transform_1, window_bounds = array<i64: 9, 2, 1>}, {pipeline_mode = #tpu.pipeline_mode<synchronous>, transform_indices = @transform_2, window_bounds = array<i64: 25, 2, 1>}, {pipeline_mode = #tpu.pipeline_mode<synchronous>, transform_indices = @transform_3, window_bounds = array<i64: 4, 8, 1>}, {pipeline_mode = #tpu.pipeline_mode<synchronous>, transform_indices = @transform_4, window_bounds = array<i64: 8, 1>}, {transform_indices = @transform_5, window_bounds = array<i64: 1, 8, 384>}]} {
    %cst = arith.constant 0.000000e+00 : f32
    %0 = vector.broadcast %cst : f32 to vector<1x8x384xf32>
    %cst_0 = arith.constant 0.000000e+00 : f32
    %1 = vector.broadcast %cst_0 : f32 to vector<1x2x384xf32>
    %c0 = arith.constant 0 : index
    %c0_1 = arith.constant 0 : index
    %c0_2 = arith.constant 0 : index
    %c25 = arith.constant 25 : index
    %2 = vector.load %arg1[%c0, %c0_1, %c0_2, %c25] : memref<1x1x4x504xf32, #tpu.memory_space<vmem>>, vector<1x1x2x384xf32>
    %3 = vector.shape_cast %2 : vector<1x1x2x384xf32> to vector<1x2x384xf32>
    %c0_3 = arith.constant 0 : index
    %c0_4 = arith.constant 0 : index
    %c0_5 = arith.constant 0 : index
    %4 = vector.load %arg2[%c0_3, %c0_4, %c0_5] : memref<9x2x1xf32, #tpu.memory_space<vmem>>, vector<1x2x1xf32>
    %5 = vector.shape_cast %4 : vector<1x2x1xf32> to vector<2x1xf32>
    %6 = vector.shape_cast %5 : vector<2x1xf32> to vector<1x2x1xf32>
    %7 = vector.broadcast %6 : vector<1x2x1xf32> to vector<1x2x384xf32>
    %8 = arith.mulf %3, %7 : vector<1x2x384xf32>
    %9 = arith.addf %1, %8 : vector<1x2x384xf32>
    %c0_6 = arith.constant 0 : index
    %c0_7 = arith.constant 0 : index
    %c0_8 = arith.constant 0 : index
    %c26 = arith.constant 26 : index
    %10 = vector.load %arg1[%c0_6, %c0_7, %c0_8, %c26] : memref<1x1x4x504xf32, #tpu.memory_space<vmem>>, vector<1x1x2x384xf32>
    %11 = vector.shape_cast %10 : vector<1x1x2x384xf32> to vector<1x2x384xf32>
    %c1 = arith.constant 1 : index
    %c0_9 = arith.constant 0 : index
    %c0_10 = arith.constant 0 : index
    %12 = vector.load %arg2[%c1, %c0_9, %c0_10] : memref<9x2x1xf32, #tpu.memory_space<vmem>>, vector<1x2x1xf32>
    %13 = vector.shape_cast %12 : vector<1x2x1xf32> to vector<2x1xf32>
    %14 = vector.shape_cast %13 : vector<2x1xf32> to vector<1x2x1xf32>
    %15 = vector.broadcast %14 : vector<1x2x1xf32> to vector<1x2x384xf32>
    %16 = arith.mulf %11, %15 : vector<1x2x384xf32>
    %17 = arith.addf %9, %16 : vector<1x2x384xf32>
    %c0_11 = arith.constant 0 : index
    %c0_12 = arith.constant 0 : index
    %c0_13 = arith.constant 0 : index
    %c27 = arith.constant 27 : index
    %18 = vector.load %arg1[%c0_11, %c0_12, %c0_13, %c27] : memref<1x1x4x504xf32, #tpu.memory_space<vmem>>, vector<1x1x2x384xf32>
    %19 = vector.shape_cast %18 : vector<1x1x2x384xf32> to vector<1x2x384xf32>
    %c2 = arith.constant 2 : index
    %c0_14 = arith.constant 0 : index
    %c0_15 = arith.constant 0 : index
    %20 = vector.load %arg2[%c2, %c0_14, %c0_15] : memref<9x2x1xf32, #tpu.memory_space<vmem>>, vector<1x2x1xf32>
    %21 = vector.shape_cast %20 : vector<1x2x1xf32> to vector<2x1xf32>
    %22 = vector.shape_cast %21 : vector<2x1xf32> to vector<1x2x1xf32>
    %23 = vector.broadcast %22 : vector<1x2x1xf32> to vector<1x2x384xf32>
    %24 = arith.mulf %19, %23 : vector<1x2x384xf32>
    %25 = arith.addf %17, %24 : vector<1x2x384xf32>
    %c0_16 = arith.constant 0 : index
    %c0_17 = arith.constant 0 : index
    %c0_18 = arith.constant 0 : index
    %c49 = arith.constant 49 : index
    %26 = vector.load %arg1[%c0_16, %c0_17, %c0_18, %c49] : memref<1x1x4x504xf32, #tpu.memory_space<vmem>>, vector<1x1x2x384xf32>
    %27 = vector.shape_cast %26 : vector<1x1x2x384xf32> to vector<1x2x384xf32>
    %c3 = arith.constant 3 : index
    %c0_19 = arith.constant 0 : index
    %c0_20 = arith.constant 0 : index
    %28 = vector.load %arg2[%c3, %c0_19, %c0_20] : memref<9x2x1xf32, #tpu.memory_space<vmem>>, vector<1x2x1xf32>
    %29 = vector.shape_cast %28 : vector<1x2x1xf32> to vector<2x1xf32>
    %30 = vector.shape_cast %29 : vector<2x1xf32> to vector<1x2x1xf32>
    %31 = vector.broadcast %30 : vector<1x2x1xf32> to vector<1x2x384xf32>
    %32 = arith.mulf %27, %31 : vector<1x2x384xf32>
    %33 = arith.addf %25, %32 : vector<1x2x384xf32>
    %c0_21 = arith.constant 0 : index
    %c0_22 = arith.constant 0 : index
    %c0_23 = arith.constant 0 : index
    %c50 = arith.constant 50 : index
    %34 = vector.load %arg1[%c0_21, %c0_22, %c0_23, %c50] : memref<1x1x4x504xf32, #tpu.memory_space<vmem>>, vector<1x1x2x384xf32>
    %35 = vector.shape_cast %34 : vector<1x1x2x384xf32> to vector<1x2x384xf32>
    %c4 = arith.constant 4 : index
    %c0_24 = arith.constant 0 : index
    %c0_25 = arith.constant 0 : index
    %36 = vector.load %arg2[%c4, %c0_24, %c0_25] : memref<9x2x1xf32, #tpu.memory_space<vmem>>, vector<1x2x1xf32>
    %37 = vector.shape_cast %36 : vector<1x2x1xf32> to vector<2x1xf32>
    %38 = vector.shape_cast %37 : vector<2x1xf32> to vector<1x2x1xf32>
    %39 = vector.broadcast %38 : vector<1x2x1xf32> to vector<1x2x384xf32>
    %40 = arith.mulf %35, %39 : vector<1x2x384xf32>
    %41 = arith.addf %33, %40 : vector<1x2x384xf32>
    %c0_26 = arith.constant 0 : index
    %c0_27 = arith.constant 0 : index
    %c0_28 = arith.constant 0 : index
    %c51 = arith.constant 51 : index
    %42 = vector.load %arg1[%c0_26, %c0_27, %c0_28, %c51] : memref<1x1x4x504xf32, #tpu.memory_space<vmem>>, vector<1x1x2x384xf32>
    %43 = vector.shape_cast %42 : vector<1x1x2x384xf32> to vector<1x2x384xf32>
    %c5 = arith.constant 5 : index
    %c0_29 = arith.constant 0 : index
    %c0_30 = arith.constant 0 : index
    %44 = vector.load %arg2[%c5, %c0_29, %c0_30] : memref<9x2x1xf32, #tpu.memory_space<vmem>>, vector<1x2x1xf32>
    %45 = vector.shape_cast %44 : vector<1x2x1xf32> to vector<2x1xf32>
    %46 = vector.shape_cast %45 : vector<2x1xf32> to vector<1x2x1xf32>
    %47 = vector.broadcast %46 : vector<1x2x1xf32> to vector<1x2x384xf32>
    %48 = arith.mulf %43, %47 : vector<1x2x384xf32>
    %49 = arith.addf %41, %48 : vector<1x2x384xf32>
    %c0_31 = arith.constant 0 : index
    %c0_32 = arith.constant 0 : index
    %c0_33 = arith.constant 0 : index
    %c73 = arith.constant 73 : index
    %50 = vector.load %arg1[%c0_31, %c0_32, %c0_33, %c73] : memref<1x1x4x504xf32, #tpu.memory_space<vmem>>, vector<1x1x2x384xf32>
    %51 = vector.shape_cast %50 : vector<1x1x2x384xf32> to vector<1x2x384xf32>
    %c6 = arith.constant 6 : index
    %c0_34 = arith.constant 0 : index
    %c0_35 = arith.constant 0 : index
    %52 = vector.load %arg2[%c6, %c0_34, %c0_35] : memref<9x2x1xf32, #tpu.memory_space<vmem>>, vector<1x2x1xf32>
    %53 = vector.shape_cast %52 : vector<1x2x1xf32> to vector<2x1xf32>
    %54 = vector.shape_cast %53 : vector<2x1xf32> to vector<1x2x1xf32>
    %55 = vector.broadcast %54 : vector<1x2x1xf32> to vector<1x2x384xf32>
    %56 = arith.mulf %51, %55 : vector<1x2x384xf32>
    %57 = arith.addf %49, %56 : vector<1x2x384xf32>
    %c0_36 = arith.constant 0 : index
    %c0_37 = arith.constant 0 : index
    %c0_38 = arith.constant 0 : index
    %c74 = arith.constant 74 : index
    %58 = vector.load %arg1[%c0_36, %c0_37, %c0_38, %c74] : memref<1x1x4x504xf32, #tpu.memory_space<vmem>>, vector<1x1x2x384xf32>
    %59 = vector.shape_cast %58 : vector<1x1x2x384xf32> to vector<1x2x384xf32>
    %c7 = arith.constant 7 : index
    %c0_39 = arith.constant 0 : index
    %c0_40 = arith.constant 0 : index
    %60 = vector.load %arg2[%c7, %c0_39, %c0_40] : memref<9x2x1xf32, #tpu.memory_space<vmem>>, vector<1x2x1xf32>
    %61 = vector.shape_cast %60 : vector<1x2x1xf32> to vector<2x1xf32>
    %62 = vector.shape_cast %61 : vector<2x1xf32> to vector<1x2x1xf32>
    %63 = vector.broadcast %62 : vector<1x2x1xf32> to vector<1x2x384xf32>
    %64 = arith.mulf %59, %63 : vector<1x2x384xf32>
    %65 = arith.addf %57, %64 : vector<1x2x384xf32>
    %c0_41 = arith.constant 0 : index
    %c0_42 = arith.constant 0 : index
    %c0_43 = arith.constant 0 : index
    %c75 = arith.constant 75 : index
    %66 = vector.load %arg1[%c0_41, %c0_42, %c0_43, %c75] : memref<1x1x4x504xf32, #tpu.memory_space<vmem>>, vector<1x1x2x384xf32>
    %67 = vector.shape_cast %66 : vector<1x1x2x384xf32> to vector<1x2x384xf32>
    %c8 = arith.constant 8 : index
    %c0_44 = arith.constant 0 : index
    %c0_45 = arith.constant 0 : index
    %68 = vector.load %arg2[%c8, %c0_44, %c0_45] : memref<9x2x1xf32, #tpu.memory_space<vmem>>, vector<1x2x1xf32>
    %69 = vector.shape_cast %68 : vector<1x2x1xf32> to vector<2x1xf32>
    %70 = vector.shape_cast %69 : vector<2x1xf32> to vector<1x2x1xf32>
    %71 = vector.broadcast %70 : vector<1x2x1xf32> to vector<1x2x384xf32>
    %72 = arith.mulf %67, %71 : vector<1x2x384xf32>
    %73 = arith.addf %65, %72 : vector<1x2x384xf32>
    %74 = vector.extract_strided_slice %73 {offsets = [0, 0, 0], sizes = [1, 1, 384], strides = [1, 1, 1]} : vector<1x2x384xf32> to vector<1x1x384xf32>
    %c0_46 = arith.constant 0 : index
    %c0_47 = arith.constant 0 : index
    %c0_48 = arith.constant 0 : index
    %75 = vector.load %arg4[%c0_46, %c0_47, %c0_48] : memref<4x8x1xf32, #tpu.memory_space<vmem>>, vector<1x8x1xf32>
    %76 = vector.shape_cast %75 : vector<1x8x1xf32> to vector<8x1xf32>
    %77 = vector.shape_cast %76 : vector<8x1xf32> to vector<1x8x1xf32>
    %78 = vector.broadcast %74 : vector<1x1x384xf32> to vector<1x8x384xf32>
    %79 = vector.broadcast %77 : vector<1x8x1xf32> to vector<1x8x384xf32>
    %80 = arith.mulf %78, %79 : vector<1x8x384xf32>
    %81 = arith.addf %0, %80 : vector<1x8x384xf32>
    %82 = vector.extract_strided_slice %73 {offsets = [0, 1, 0], sizes = [1, 1, 384], strides = [1, 1, 1]} : vector<1x2x384xf32> to vector<1x1x384xf32>
    %c1_49 = arith.constant 1 : index
    %c0_50 = arith.constant 0 : index
    %c0_51 = arith.constant 0 : index
    %83 = vector.load %arg4[%c1_49, %c0_50, %c0_51] : memref<4x8x1xf32, #tpu.memory_space<vmem>>, vector<1x8x1xf32>
    %84 = vector.shape_cast %83 : vector<1x8x1xf32> to vector<8x1xf32>
    %85 = vector.shape_cast %84 : vector<8x1xf32> to vector<1x8x1xf32>
    %86 = vector.broadcast %82 : vector<1x1x384xf32> to vector<1x8x384xf32>
    %87 = vector.broadcast %85 : vector<1x8x1xf32> to vector<1x8x384xf32>
    %88 = arith.mulf %86, %87 : vector<1x8x384xf32>
    %89 = arith.addf %81, %88 : vector<1x8x384xf32>
    %cst_52 = arith.constant 0.000000e+00 : f32
    %90 = vector.broadcast %cst_52 : f32 to vector<1x2x384xf32>
    %c0_53 = arith.constant 0 : index
    %c0_54 = arith.constant 0 : index
    %c2_55 = arith.constant 2 : index
    %c0_56 = arith.constant 0 : index
    %91 = vector.load %arg1[%c0_53, %c0_54, %c2_55, %c0_56] : memref<1x1x4x504xf32, #tpu.memory_space<vmem>>, vector<1x1x2x384xf32>
    %92 = vector.shape_cast %91 : vector<1x1x2x384xf32> to vector<1x2x384xf32>
    %c0_57 = arith.constant 0 : index
    %c0_58 = arith.constant 0 : index
    %c0_59 = arith.constant 0 : index
    %93 = vector.load %arg3[%c0_57, %c0_58, %c0_59] : memref<25x2x1xf32, #tpu.memory_space<vmem>>, vector<1x2x1xf32>
    %94 = vector.shape_cast %93 : vector<1x2x1xf32> to vector<2x1xf32>
    %95 = vector.shape_cast %94 : vector<2x1xf32> to vector<1x2x1xf32>
    %96 = vector.broadcast %95 : vector<1x2x1xf32> to vector<1x2x384xf32>
    %97 = arith.mulf %92, %96 : vector<1x2x384xf32>
    %98 = arith.addf %90, %97 : vector<1x2x384xf32>
    %c0_60 = arith.constant 0 : index
    %c0_61 = arith.constant 0 : index
    %c2_62 = arith.constant 2 : index
    %c1_63 = arith.constant 1 : index
    %99 = vector.load %arg1[%c0_60, %c0_61, %c2_62, %c1_63] : memref<1x1x4x504xf32, #tpu.memory_space<vmem>>, vector<1x1x2x384xf32>
    %100 = vector.shape_cast %99 : vector<1x1x2x384xf32> to vector<1x2x384xf32>
    %c1_64 = arith.constant 1 : index
    %c0_65 = arith.constant 0 : index
    %c0_66 = arith.constant 0 : index
    %101 = vector.load %arg3[%c1_64, %c0_65, %c0_66] : memref<25x2x1xf32, #tpu.memory_space<vmem>>, vector<1x2x1xf32>
    %102 = vector.shape_cast %101 : vector<1x2x1xf32> to vector<2x1xf32>
    %103 = vector.shape_cast %102 : vector<2x1xf32> to vector<1x2x1xf32>
    %104 = vector.broadcast %103 : vector<1x2x1xf32> to vector<1x2x384xf32>
    %105 = arith.mulf %100, %104 : vector<1x2x384xf32>
    %106 = arith.addf %98, %105 : vector<1x2x384xf32>
    %c0_67 = arith.constant 0 : index
    %c0_68 = arith.constant 0 : index
    %c2_69 = arith.constant 2 : index
    %c2_70 = arith.constant 2 : index
    %107 = vector.load %arg1[%c0_67, %c0_68, %c2_69, %c2_70] : memref<1x1x4x504xf32, #tpu.memory_space<vmem>>, vector<1x1x2x384xf32>
    %108 = vector.shape_cast %107 : vector<1x1x2x384xf32> to vector<1x2x384xf32>
    %c2_71 = arith.constant 2 : index
    %c0_72 = arith.constant 0 : index
    %c0_73 = arith.constant 0 : index
    %109 = vector.load %arg3[%c2_71, %c0_72, %c0_73] : memref<25x2x1xf32, #tpu.memory_space<vmem>>, vector<1x2x1xf32>
    %110 = vector.shape_cast %109 : vector<1x2x1xf32> to vector<2x1xf32>
    %111 = vector.shape_cast %110 : vector<2x1xf32> to vector<1x2x1xf32>
    %112 = vector.broadcast %111 : vector<1x2x1xf32> to vector<1x2x384xf32>
    %113 = arith.mulf %108, %112 : vector<1x2x384xf32>
    %114 = arith.addf %106, %113 : vector<1x2x384xf32>
    %c0_74 = arith.constant 0 : index
    %c0_75 = arith.constant 0 : index
    %c2_76 = arith.constant 2 : index
    %c3_77 = arith.constant 3 : index
    %115 = vector.load %arg1[%c0_74, %c0_75, %c2_76, %c3_77] : memref<1x1x4x504xf32, #tpu.memory_space<vmem>>, vector<1x1x2x384xf32>
    %116 = vector.shape_cast %115 : vector<1x1x2x384xf32> to vector<1x2x384xf32>
    %c3_78 = arith.constant 3 : index
    %c0_79 = arith.constant 0 : index
    %c0_80 = arith.constant 0 : index
    %117 = vector.load %arg3[%c3_78, %c0_79, %c0_80] : memref<25x2x1xf32, #tpu.memory_space<vmem>>, vector<1x2x1xf32>
    %118 = vector.shape_cast %117 : vector<1x2x1xf32> to vector<2x1xf32>
    %119 = vector.shape_cast %118 : vector<2x1xf32> to vector<1x2x1xf32>
    %120 = vector.broadcast %119 : vector<1x2x1xf32> to vector<1x2x384xf32>
    %121 = arith.mulf %116, %120 : vector<1x2x384xf32>
    %122 = arith.addf %114, %121 : vector<1x2x384xf32>
    %c0_81 = arith.constant 0 : index
    %c0_82 = arith.constant 0 : index
    %c2_83 = arith.constant 2 : index
    %c4_84 = arith.constant 4 : index
    %123 = vector.load %arg1[%c0_81, %c0_82, %c2_83, %c4_84] : memref<1x1x4x504xf32, #tpu.memory_space<vmem>>, vector<1x1x2x384xf32>
    %124 = vector.shape_cast %123 : vector<1x1x2x384xf32> to vector<1x2x384xf32>
    %c4_85 = arith.constant 4 : index
    %c0_86 = arith.constant 0 : index
    %c0_87 = arith.constant 0 : index
    %125 = vector.load %arg3[%c4_85, %c0_86, %c0_87] : memref<25x2x1xf32, #tpu.memory_space<vmem>>, vector<1x2x1xf32>
    %126 = vector.shape_cast %125 : vector<1x2x1xf32> to vector<2x1xf32>
    %127 = vector.shape_cast %126 : vector<2x1xf32> to vector<1x2x1xf32>
    %128 = vector.broadcast %127 : vector<1x2x1xf32> to vector<1x2x384xf32>
    %129 = arith.mulf %124, %128 : vector<1x2x384xf32>
    %130 = arith.addf %122, %129 : vector<1x2x384xf32>
    %c0_88 = arith.constant 0 : index
    %c0_89 = arith.constant 0 : index
    %c2_90 = arith.constant 2 : index
    %c24 = arith.constant 24 : index
    %131 = vector.load %arg1[%c0_88, %c0_89, %c2_90, %c24] : memref<1x1x4x504xf32, #tpu.memory_space<vmem>>, vector<1x1x2x384xf32>
    %132 = vector.shape_cast %131 : vector<1x1x2x384xf32> to vector<1x2x384xf32>
    %c5_91 = arith.constant 5 : index
    %c0_92 = arith.constant 0 : index
    %c0_93 = arith.constant 0 : index
    %133 = vector.load %arg3[%c5_91, %c0_92, %c0_93] : memref<25x2x1xf32, #tpu.memory_space<vmem>>, vector<1x2x1xf32>
    %134 = vector.shape_cast %133 : vector<1x2x1xf32> to vector<2x1xf32>
    %135 = vector.shape_cast %134 : vector<2x1xf32> to vector<1x2x1xf32>
    %136 = vector.broadcast %135 : vector<1x2x1xf32> to vector<1x2x384xf32>
    %137 = arith.mulf %132, %136 : vector<1x2x384xf32>
    %138 = arith.addf %130, %137 : vector<1x2x384xf32>
    %c0_94 = arith.constant 0 : index
    %c0_95 = arith.constant 0 : index
    %c2_96 = arith.constant 2 : index
    %c25_97 = arith.constant 25 : index
    %139 = vector.load %arg1[%c0_94, %c0_95, %c2_96, %c25_97] : memref<1x1x4x504xf32, #tpu.memory_space<vmem>>, vector<1x1x2x384xf32>
    %140 = vector.shape_cast %139 : vector<1x1x2x384xf32> to vector<1x2x384xf32>
    %c6_98 = arith.constant 6 : index
    %c0_99 = arith.constant 0 : index
    %c0_100 = arith.constant 0 : index
    %141 = vector.load %arg3[%c6_98, %c0_99, %c0_100] : memref<25x2x1xf32, #tpu.memory_space<vmem>>, vector<1x2x1xf32>
    %142 = vector.shape_cast %141 : vector<1x2x1xf32> to vector<2x1xf32>
    %143 = vector.shape_cast %142 : vector<2x1xf32> to vector<1x2x1xf32>
    %144 = vector.broadcast %143 : vector<1x2x1xf32> to vector<1x2x384xf32>
    %145 = arith.mulf %140, %144 : vector<1x2x384xf32>
    %146 = arith.addf %138, %145 : vector<1x2x384xf32>
    %c0_101 = arith.constant 0 : index
    %c0_102 = arith.constant 0 : index
    %c2_103 = arith.constant 2 : index
    %c26_104 = arith.constant 26 : index
    %147 = vector.load %arg1[%c0_101, %c0_102, %c2_103, %c26_104] : memref<1x1x4x504xf32, #tpu.memory_space<vmem>>, vector<1x1x2x384xf32>
    %148 = vector.shape_cast %147 : vector<1x1x2x384xf32> to vector<1x2x384xf32>
    %c7_105 = arith.constant 7 : index
    %c0_106 = arith.constant 0 : index
    %c0_107 = arith.constant 0 : index
    %149 = vector.load %arg3[%c7_105, %c0_106, %c0_107] : memref<25x2x1xf32, #tpu.memory_space<vmem>>, vector<1x2x1xf32>
    %150 = vector.shape_cast %149 : vector<1x2x1xf32> to vector<2x1xf32>
    %151 = vector.shape_cast %150 : vector<2x1xf32> to vector<1x2x1xf32>
    %152 = vector.broadcast %151 : vector<1x2x1xf32> to vector<1x2x384xf32>
    %153 = arith.mulf %148, %152 : vector<1x2x384xf32>
    %154 = arith.addf %146, %153 : vector<1x2x384xf32>
    %c0_108 = arith.constant 0 : index
    %c0_109 = arith.constant 0 : index
    %c2_110 = arith.constant 2 : index
    %c27_111 = arith.constant 27 : index
    %155 = vector.load %arg1[%c0_108, %c0_109, %c2_110, %c27_111] : memref<1x1x4x504xf32, #tpu.memory_space<vmem>>, vector<1x1x2x384xf32>
    %156 = vector.shape_cast %155 : vector<1x1x2x384xf32> to vector<1x2x384xf32>
    %c8_112 = arith.constant 8 : index
    %c0_113 = arith.constant 0 : index
    %c0_114 = arith.constant 0 : index
    %157 = vector.load %arg3[%c8_112, %c0_113, %c0_114] : memref<25x2x1xf32, #tpu.memory_space<vmem>>, vector<1x2x1xf32>
    %158 = vector.shape_cast %157 : vector<1x2x1xf32> to vector<2x1xf32>
    %159 = vector.shape_cast %158 : vector<2x1xf32> to vector<1x2x1xf32>
    %160 = vector.broadcast %159 : vector<1x2x1xf32> to vector<1x2x384xf32>
    %161 = arith.mulf %156, %160 : vector<1x2x384xf32>
    %162 = arith.addf %154, %161 : vector<1x2x384xf32>
    %c0_115 = arith.constant 0 : index
    %c0_116 = arith.constant 0 : index
    %c2_117 = arith.constant 2 : index
    %c28 = arith.constant 28 : index
    %163 = vector.load %arg1[%c0_115, %c0_116, %c2_117, %c28] : memref<1x1x4x504xf32, #tpu.memory_space<vmem>>, vector<1x1x2x384xf32>
    %164 = vector.shape_cast %163 : vector<1x1x2x384xf32> to vector<1x2x384xf32>
    %c9 = arith.constant 9 : index
    %c0_118 = arith.constant 0 : index
    %c0_119 = arith.constant 0 : index
    %165 = vector.load %arg3[%c9, %c0_118, %c0_119] : memref<25x2x1xf32, #tpu.memory_space<vmem>>, vector<1x2x1xf32>
    %166 = vector.shape_cast %165 : vector<1x2x1xf32> to vector<2x1xf32>
    %167 = vector.shape_cast %166 : vector<2x1xf32> to vector<1x2x1xf32>
    %168 = vector.broadcast %167 : vector<1x2x1xf32> to vector<1x2x384xf32>
    %169 = arith.mulf %164, %168 : vector<1x2x384xf32>
    %170 = arith.addf %162, %169 : vector<1x2x384xf32>
    %c0_120 = arith.constant 0 : index
    %c0_121 = arith.constant 0 : index
    %c2_122 = arith.constant 2 : index
    %c48 = arith.constant 48 : index
    %171 = vector.load %arg1[%c0_120, %c0_121, %c2_122, %c48] : memref<1x1x4x504xf32, #tpu.memory_space<vmem>>, vector<1x1x2x384xf32>
    %172 = vector.shape_cast %171 : vector<1x1x2x384xf32> to vector<1x2x384xf32>
    %c10 = arith.constant 10 : index
    %c0_123 = arith.constant 0 : index
    %c0_124 = arith.constant 0 : index
    %173 = vector.load %arg3[%c10, %c0_123, %c0_124] : memref<25x2x1xf32, #tpu.memory_space<vmem>>, vector<1x2x1xf32>
    %174 = vector.shape_cast %173 : vector<1x2x1xf32> to vector<2x1xf32>
    %175 = vector.shape_cast %174 : vector<2x1xf32> to vector<1x2x1xf32>
    %176 = vector.broadcast %175 : vector<1x2x1xf32> to vector<1x2x384xf32>
    %177 = arith.mulf %172, %176 : vector<1x2x384xf32>
    %178 = arith.addf %170, %177 : vector<1x2x384xf32>
    %c0_125 = arith.constant 0 : index
    %c0_126 = arith.constant 0 : index
    %c2_127 = arith.constant 2 : index
    %c49_128 = arith.constant 49 : index
    %179 = vector.load %arg1[%c0_125, %c0_126, %c2_127, %c49_128] : memref<1x1x4x504xf32, #tpu.memory_space<vmem>>, vector<1x1x2x384xf32>
    %180 = vector.shape_cast %179 : vector<1x1x2x384xf32> to vector<1x2x384xf32>
    %c11 = arith.constant 11 : index
    %c0_129 = arith.constant 0 : index
    %c0_130 = arith.constant 0 : index
    %181 = vector.load %arg3[%c11, %c0_129, %c0_130] : memref<25x2x1xf32, #tpu.memory_space<vmem>>, vector<1x2x1xf32>
    %182 = vector.shape_cast %181 : vector<1x2x1xf32> to vector<2x1xf32>
    %183 = vector.shape_cast %182 : vector<2x1xf32> to vector<1x2x1xf32>
    %184 = vector.broadcast %183 : vector<1x2x1xf32> to vector<1x2x384xf32>
    %185 = arith.mulf %180, %184 : vector<1x2x384xf32>
    %186 = arith.addf %178, %185 : vector<1x2x384xf32>
    %c0_131 = arith.constant 0 : index
    %c0_132 = arith.constant 0 : index
    %c2_133 = arith.constant 2 : index
    %c50_134 = arith.constant 50 : index
    %187 = vector.load %arg1[%c0_131, %c0_132, %c2_133, %c50_134] : memref<1x1x4x504xf32, #tpu.memory_space<vmem>>, vector<1x1x2x384xf32>
    %188 = vector.shape_cast %187 : vector<1x1x2x384xf32> to vector<1x2x384xf32>
    %c12 = arith.constant 12 : index
    %c0_135 = arith.constant 0 : index
    %c0_136 = arith.constant 0 : index
    %189 = vector.load %arg3[%c12, %c0_135, %c0_136] : memref<25x2x1xf32, #tpu.memory_space<vmem>>, vector<1x2x1xf32>
    %190 = vector.shape_cast %189 : vector<1x2x1xf32> to vector<2x1xf32>
    %191 = vector.shape_cast %190 : vector<2x1xf32> to vector<1x2x1xf32>
    %192 = vector.broadcast %191 : vector<1x2x1xf32> to vector<1x2x384xf32>
    %193 = arith.mulf %188, %192 : vector<1x2x384xf32>
    %194 = arith.addf %186, %193 : vector<1x2x384xf32>
    %c0_137 = arith.constant 0 : index
    %c0_138 = arith.constant 0 : index
    %c2_139 = arith.constant 2 : index
    %c51_140 = arith.constant 51 : index
    %195 = vector.load %arg1[%c0_137, %c0_138, %c2_139, %c51_140] : memref<1x1x4x504xf32, #tpu.memory_space<vmem>>, vector<1x1x2x384xf32>
    %196 = vector.shape_cast %195 : vector<1x1x2x384xf32> to vector<1x2x384xf32>
    %c13 = arith.constant 13 : index
    %c0_141 = arith.constant 0 : index
    %c0_142 = arith.constant 0 : index
    %197 = vector.load %arg3[%c13, %c0_141, %c0_142] : memref<25x2x1xf32, #tpu.memory_space<vmem>>, vector<1x2x1xf32>
    %198 = vector.shape_cast %197 : vector<1x2x1xf32> to vector<2x1xf32>
    %199 = vector.shape_cast %198 : vector<2x1xf32> to vector<1x2x1xf32>
    %200 = vector.broadcast %199 : vector<1x2x1xf32> to vector<1x2x384xf32>
    %201 = arith.mulf %196, %200 : vector<1x2x384xf32>
    %202 = arith.addf %194, %201 : vector<1x2x384xf32>
    %c0_143 = arith.constant 0 : index
    %c0_144 = arith.constant 0 : index
    %c2_145 = arith.constant 2 : index
    %c52 = arith.constant 52 : index
    %203 = vector.load %arg1[%c0_143, %c0_144, %c2_145, %c52] : memref<1x1x4x504xf32, #tpu.memory_space<vmem>>, vector<1x1x2x384xf32>
    %204 = vector.shape_cast %203 : vector<1x1x2x384xf32> to vector<1x2x384xf32>
    %c14 = arith.constant 14 : index
    %c0_146 = arith.constant 0 : index
    %c0_147 = arith.constant 0 : index
    %205 = vector.load %arg3[%c14, %c0_146, %c0_147] : memref<25x2x1xf32, #tpu.memory_space<vmem>>, vector<1x2x1xf32>
    %206 = vector.shape_cast %205 : vector<1x2x1xf32> to vector<2x1xf32>
    %207 = vector.shape_cast %206 : vector<2x1xf32> to vector<1x2x1xf32>
    %208 = vector.broadcast %207 : vector<1x2x1xf32> to vector<1x2x384xf32>
    %209 = arith.mulf %204, %208 : vector<1x2x384xf32>
    %210 = arith.addf %202, %209 : vector<1x2x384xf32>
    %c0_148 = arith.constant 0 : index
    %c0_149 = arith.constant 0 : index
    %c2_150 = arith.constant 2 : index
    %c72 = arith.constant 72 : index
    %211 = vector.load %arg1[%c0_148, %c0_149, %c2_150, %c72] : memref<1x1x4x504xf32, #tpu.memory_space<vmem>>, vector<1x1x2x384xf32>
    %212 = vector.shape_cast %211 : vector<1x1x2x384xf32> to vector<1x2x384xf32>
    %c15 = arith.constant 15 : index
    %c0_151 = arith.constant 0 : index
    %c0_152 = arith.constant 0 : index
    %213 = vector.load %arg3[%c15, %c0_151, %c0_152] : memref<25x2x1xf32, #tpu.memory_space<vmem>>, vector<1x2x1xf32>
    %214 = vector.shape_cast %213 : vector<1x2x1xf32> to vector<2x1xf32>
    %215 = vector.shape_cast %214 : vector<2x1xf32> to vector<1x2x1xf32>
    %216 = vector.broadcast %215 : vector<1x2x1xf32> to vector<1x2x384xf32>
    %217 = arith.mulf %212, %216 : vector<1x2x384xf32>
    %218 = arith.addf %210, %217 : vector<1x2x384xf32>
    %c0_153 = arith.constant 0 : index
    %c0_154 = arith.constant 0 : index
    %c2_155 = arith.constant 2 : index
    %c73_156 = arith.constant 73 : index
    %219 = vector.load %arg1[%c0_153, %c0_154, %c2_155, %c73_156] : memref<1x1x4x504xf32, #tpu.memory_space<vmem>>, vector<1x1x2x384xf32>
    %220 = vector.shape_cast %219 : vector<1x1x2x384xf32> to vector<1x2x384xf32>
    %c16 = arith.constant 16 : index
    %c0_157 = arith.constant 0 : index
    %c0_158 = arith.constant 0 : index
    %221 = vector.load %arg3[%c16, %c0_157, %c0_158] : memref<25x2x1xf32, #tpu.memory_space<vmem>>, vector<1x2x1xf32>
    %222 = vector.shape_cast %221 : vector<1x2x1xf32> to vector<2x1xf32>
    %223 = vector.shape_cast %222 : vector<2x1xf32> to vector<1x2x1xf32>
    %224 = vector.broadcast %223 : vector<1x2x1xf32> to vector<1x2x384xf32>
    %225 = arith.mulf %220, %224 : vector<1x2x384xf32>
    %226 = arith.addf %218, %225 : vector<1x2x384xf32>
    %c0_159 = arith.constant 0 : index
    %c0_160 = arith.constant 0 : index
    %c2_161 = arith.constant 2 : index
    %c74_162 = arith.constant 74 : index
    %227 = vector.load %arg1[%c0_159, %c0_160, %c2_161, %c74_162] : memref<1x1x4x504xf32, #tpu.memory_space<vmem>>, vector<1x1x2x384xf32>
    %228 = vector.shape_cast %227 : vector<1x1x2x384xf32> to vector<1x2x384xf32>
    %c17 = arith.constant 17 : index
    %c0_163 = arith.constant 0 : index
    %c0_164 = arith.constant 0 : index
    %229 = vector.load %arg3[%c17, %c0_163, %c0_164] : memref<25x2x1xf32, #tpu.memory_space<vmem>>, vector<1x2x1xf32>
    %230 = vector.shape_cast %229 : vector<1x2x1xf32> to vector<2x1xf32>
    %231 = vector.shape_cast %230 : vector<2x1xf32> to vector<1x2x1xf32>
    %232 = vector.broadcast %231 : vector<1x2x1xf32> to vector<1x2x384xf32>
    %233 = arith.mulf %228, %232 : vector<1x2x384xf32>
    %234 = arith.addf %226, %233 : vector<1x2x384xf32>
    %c0_165 = arith.constant 0 : index
    %c0_166 = arith.constant 0 : index
    %c2_167 = arith.constant 2 : index
    %c75_168 = arith.constant 75 : index
    %235 = vector.load %arg1[%c0_165, %c0_166, %c2_167, %c75_168] : memref<1x1x4x504xf32, #tpu.memory_space<vmem>>, vector<1x1x2x384xf32>
    %236 = vector.shape_cast %235 : vector<1x1x2x384xf32> to vector<1x2x384xf32>
    %c18 = arith.constant 18 : index
    %c0_169 = arith.constant 0 : index
    %c0_170 = arith.constant 0 : index
    %237 = vector.load %arg3[%c18, %c0_169, %c0_170] : memref<25x2x1xf32, #tpu.memory_space<vmem>>, vector<1x2x1xf32>
    %238 = vector.shape_cast %237 : vector<1x2x1xf32> to vector<2x1xf32>
    %239 = vector.shape_cast %238 : vector<2x1xf32> to vector<1x2x1xf32>
    %240 = vector.broadcast %239 : vector<1x2x1xf32> to vector<1x2x384xf32>
    %241 = arith.mulf %236, %240 : vector<1x2x384xf32>
    %242 = arith.addf %234, %241 : vector<1x2x384xf32>
    %c0_171 = arith.constant 0 : index
    %c0_172 = arith.constant 0 : index
    %c2_173 = arith.constant 2 : index
    %c76 = arith.constant 76 : index
    %243 = vector.load %arg1[%c0_171, %c0_172, %c2_173, %c76] : memref<1x1x4x504xf32, #tpu.memory_space<vmem>>, vector<1x1x2x384xf32>
    %244 = vector.shape_cast %243 : vector<1x1x2x384xf32> to vector<1x2x384xf32>
    %c19 = arith.constant 19 : index
    %c0_174 = arith.constant 0 : index
    %c0_175 = arith.constant 0 : index
    %245 = vector.load %arg3[%c19, %c0_174, %c0_175] : memref<25x2x1xf32, #tpu.memory_space<vmem>>, vector<1x2x1xf32>
    %246 = vector.shape_cast %245 : vector<1x2x1xf32> to vector<2x1xf32>
    %247 = vector.shape_cast %246 : vector<2x1xf32> to vector<1x2x1xf32>
    %248 = vector.broadcast %247 : vector<1x2x1xf32> to vector<1x2x384xf32>
    %249 = arith.mulf %244, %248 : vector<1x2x384xf32>
    %250 = arith.addf %242, %249 : vector<1x2x384xf32>
    %c0_176 = arith.constant 0 : index
    %c0_177 = arith.constant 0 : index
    %c2_178 = arith.constant 2 : index
    %c96 = arith.constant 96 : index
    %251 = vector.load %arg1[%c0_176, %c0_177, %c2_178, %c96] : memref<1x1x4x504xf32, #tpu.memory_space<vmem>>, vector<1x1x2x384xf32>
    %252 = vector.shape_cast %251 : vector<1x1x2x384xf32> to vector<1x2x384xf32>
    %c20 = arith.constant 20 : index
    %c0_179 = arith.constant 0 : index
    %c0_180 = arith.constant 0 : index
    %253 = vector.load %arg3[%c20, %c0_179, %c0_180] : memref<25x2x1xf32, #tpu.memory_space<vmem>>, vector<1x2x1xf32>
    %254 = vector.shape_cast %253 : vector<1x2x1xf32> to vector<2x1xf32>
    %255 = vector.shape_cast %254 : vector<2x1xf32> to vector<1x2x1xf32>
    %256 = vector.broadcast %255 : vector<1x2x1xf32> to vector<1x2x384xf32>
    %257 = arith.mulf %252, %256 : vector<1x2x384xf32>
    %258 = arith.addf %250, %257 : vector<1x2x384xf32>
    %c0_181 = arith.constant 0 : index
    %c0_182 = arith.constant 0 : index
    %c2_183 = arith.constant 2 : index
    %c97 = arith.constant 97 : index
    %259 = vector.load %arg1[%c0_181, %c0_182, %c2_183, %c97] : memref<1x1x4x504xf32, #tpu.memory_space<vmem>>, vector<1x1x2x384xf32>
    %260 = vector.shape_cast %259 : vector<1x1x2x384xf32> to vector<1x2x384xf32>
    %c21 = arith.constant 21 : index
    %c0_184 = arith.constant 0 : index
    %c0_185 = arith.constant 0 : index
    %261 = vector.load %arg3[%c21, %c0_184, %c0_185] : memref<25x2x1xf32, #tpu.memory_space<vmem>>, vector<1x2x1xf32>
    %262 = vector.shape_cast %261 : vector<1x2x1xf32> to vector<2x1xf32>
    %263 = vector.shape_cast %262 : vector<2x1xf32> to vector<1x2x1xf32>
    %264 = vector.broadcast %263 : vector<1x2x1xf32> to vector<1x2x384xf32>
    %265 = arith.mulf %260, %264 : vector<1x2x384xf32>
    %266 = arith.addf %258, %265 : vector<1x2x384xf32>
    %c0_186 = arith.constant 0 : index
    %c0_187 = arith.constant 0 : index
    %c2_188 = arith.constant 2 : index
    %c98 = arith.constant 98 : index
    %267 = vector.load %arg1[%c0_186, %c0_187, %c2_188, %c98] : memref<1x1x4x504xf32, #tpu.memory_space<vmem>>, vector<1x1x2x384xf32>
    %268 = vector.shape_cast %267 : vector<1x1x2x384xf32> to vector<1x2x384xf32>
    %c22 = arith.constant 22 : index
    %c0_189 = arith.constant 0 : index
    %c0_190 = arith.constant 0 : index
    %269 = vector.load %arg3[%c22, %c0_189, %c0_190] : memref<25x2x1xf32, #tpu.memory_space<vmem>>, vector<1x2x1xf32>
    %270 = vector.shape_cast %269 : vector<1x2x1xf32> to vector<2x1xf32>
    %271 = vector.shape_cast %270 : vector<2x1xf32> to vector<1x2x1xf32>
    %272 = vector.broadcast %271 : vector<1x2x1xf32> to vector<1x2x384xf32>
    %273 = arith.mulf %268, %272 : vector<1x2x384xf32>
    %274 = arith.addf %266, %273 : vector<1x2x384xf32>
    %c0_191 = arith.constant 0 : index
    %c0_192 = arith.constant 0 : index
    %c2_193 = arith.constant 2 : index
    %c99 = arith.constant 99 : index
    %275 = vector.load %arg1[%c0_191, %c0_192, %c2_193, %c99] : memref<1x1x4x504xf32, #tpu.memory_space<vmem>>, vector<1x1x2x384xf32>
    %276 = vector.shape_cast %275 : vector<1x1x2x384xf32> to vector<1x2x384xf32>
    %c23 = arith.constant 23 : index
    %c0_194 = arith.constant 0 : index
    %c0_195 = arith.constant 0 : index
    %277 = vector.load %arg3[%c23, %c0_194, %c0_195] : memref<25x2x1xf32, #tpu.memory_space<vmem>>, vector<1x2x1xf32>
    %278 = vector.shape_cast %277 : vector<1x2x1xf32> to vector<2x1xf32>
    %279 = vector.shape_cast %278 : vector<2x1xf32> to vector<1x2x1xf32>
    %280 = vector.broadcast %279 : vector<1x2x1xf32> to vector<1x2x384xf32>
    %281 = arith.mulf %276, %280 : vector<1x2x384xf32>
    %282 = arith.addf %274, %281 : vector<1x2x384xf32>
    %c0_196 = arith.constant 0 : index
    %c0_197 = arith.constant 0 : index
    %c2_198 = arith.constant 2 : index
    %c100 = arith.constant 100 : index
    %283 = vector.load %arg1[%c0_196, %c0_197, %c2_198, %c100] : memref<1x1x4x504xf32, #tpu.memory_space<vmem>>, vector<1x1x2x384xf32>
    %284 = vector.shape_cast %283 : vector<1x1x2x384xf32> to vector<1x2x384xf32>
    %c24_199 = arith.constant 24 : index
    %c0_200 = arith.constant 0 : index
    %c0_201 = arith.constant 0 : index
    %285 = vector.load %arg3[%c24_199, %c0_200, %c0_201] : memref<25x2x1xf32, #tpu.memory_space<vmem>>, vector<1x2x1xf32>
    %286 = vector.shape_cast %285 : vector<1x2x1xf32> to vector<2x1xf32>
    %287 = vector.shape_cast %286 : vector<2x1xf32> to vector<1x2x1xf32>
    %288 = vector.broadcast %287 : vector<1x2x1xf32> to vector<1x2x384xf32>
    %289 = arith.mulf %284, %288 : vector<1x2x384xf32>
    %290 = arith.addf %282, %289 : vector<1x2x384xf32>
    %291 = vector.extract_strided_slice %290 {offsets = [0, 0, 0], sizes = [1, 1, 384], strides = [1, 1, 1]} : vector<1x2x384xf32> to vector<1x1x384xf32>
    %c2_202 = arith.constant 2 : index
    %c0_203 = arith.constant 0 : index
    %c0_204 = arith.constant 0 : index
    %292 = vector.load %arg4[%c2_202, %c0_203, %c0_204] : memref<4x8x1xf32, #tpu.memory_space<vmem>>, vector<1x8x1xf32>
    %293 = vector.shape_cast %292 : vector<1x8x1xf32> to vector<8x1xf32>
    %294 = vector.shape_cast %293 : vector<8x1xf32> to vector<1x8x1xf32>
    %295 = vector.broadcast %291 : vector<1x1x384xf32> to vector<1x8x384xf32>
    %296 = vector.broadcast %294 : vector<1x8x1xf32> to vector<1x8x384xf32>
    %297 = arith.mulf %295, %296 : vector<1x8x384xf32>
    %298 = arith.addf %89, %297 : vector<1x8x384xf32>
    %299 = vector.extract_strided_slice %290 {offsets = [0, 1, 0], sizes = [1, 1, 384], strides = [1, 1, 1]} : vector<1x2x384xf32> to vector<1x1x384xf32>
    %c3_205 = arith.constant 3 : index
    %c0_206 = arith.constant 0 : index
    %c0_207 = arith.constant 0 : index
    %300 = vector.load %arg4[%c3_205, %c0_206, %c0_207] : memref<4x8x1xf32, #tpu.memory_space<vmem>>, vector<1x8x1xf32>
    %301 = vector.shape_cast %300 : vector<1x8x1xf32> to vector<8x1xf32>
    %302 = vector.shape_cast %301 : vector<8x1xf32> to vector<1x8x1xf32>
    %303 = vector.broadcast %299 : vector<1x1x384xf32> to vector<1x8x384xf32>
    %304 = vector.broadcast %302 : vector<1x8x1xf32> to vector<1x8x384xf32>
    %305 = arith.mulf %303, %304 : vector<1x8x384xf32>
    %306 = arith.addf %298, %305 : vector<1x8x384xf32>
    %c0_208 = arith.constant 0 : index
    %c0_209 = arith.constant 0 : index
    %307 = vector.load %arg5[%c0_208, %c0_209] : memref<8x1xf32, #tpu.memory_space<vmem>>, vector<8x1xf32>
    %308 = vector.shape_cast %307 : vector<8x1xf32> to vector<1x8x1xf32>
    %309 = vector.broadcast %308 : vector<1x8x1xf32> to vector<1x8x384xf32>
    %310 = arith.addf %306, %309 : vector<1x8x384xf32>
    %cst_210 = arith.constant 0.000000e+00 : f32
    %311 = vector.broadcast %cst_210 : f32 to vector<1x8x384xf32>
    %312 = arith.maximumf %310, %311 : vector<1x8x384xf32>
    %c0_211 = arith.constant 0 : index
    %c0_212 = arith.constant 0 : index
    %c0_213 = arith.constant 0 : index
    %313 = vector.load %arg6[%c0_211, %c0_212, %c0_213] : memref<1x8x384xf32, #tpu.memory_space<vmem>>, vector<1x8x384xf32>
    tpu.vector_store %arg6[%c0_211, %c0_212, %c0_213], %312 {strides = array<i32>} : memref<1x8x384xf32, #tpu.memory_space<vmem>>, vector<1x8x384xf32>,
    return
  }
  func.func @transform_0(%arg0: i32) -> (i32, i32, i32, i32) {
    %c0_i32 = arith.constant 0 : i32
    %c0_i32_0 = arith.constant 0 : i32
    %c0_i32_1 = arith.constant 0 : i32
    %c0_i32_2 = arith.constant 0 : i32
    return %arg0, %c0_i32, %c0_i32_0, %c0_i32_1 : i32, i32, i32, i32
  }
  func.func @transform_1(%arg0: i32) -> (i32, i32, i32) {
    %c0_i32 = arith.constant 0 : i32
    %c0_i32_0 = arith.constant 0 : i32
    %c0_i32_1 = arith.constant 0 : i32
    %c0_i32_2 = arith.constant 0 : i32
    return %c0_i32, %c0_i32_0, %c0_i32_1 : i32, i32, i32
  }
  func.func @transform_2(%arg0: i32) -> (i32, i32, i32) {
    %c0_i32 = arith.constant 0 : i32
    %c0_i32_0 = arith.constant 0 : i32
    %c0_i32_1 = arith.constant 0 : i32
    %c0_i32_2 = arith.constant 0 : i32
    return %c0_i32, %c0_i32_0, %c0_i32_1 : i32, i32, i32
  }
  func.func @transform_3(%arg0: i32) -> (i32, i32, i32) {
    %c0_i32 = arith.constant 0 : i32
    %c0_i32_0 = arith.constant 0 : i32
    %c0_i32_1 = arith.constant 0 : i32
    %c0_i32_2 = arith.constant 0 : i32
    return %c0_i32, %c0_i32_0, %c0_i32_1 : i32, i32, i32
  }
  func.func @transform_4(%arg0: i32) -> (i32, i32) {
    %c0_i32 = arith.constant 0 : i32
    %c0_i32_0 = arith.constant 0 : i32
    %c0_i32_1 = arith.constant 0 : i32
    return %c0_i32, %c0_i32_0 : i32, i32
  }
  func.func @transform_5(%arg0: i32) -> (i32, i32, i32) {
    %c0_i32 = arith.constant 0 : i32
    %c0_i32_0 = arith.constant 0 : i32
    %c0_i32_1 = arith.constant 0 : i32
    return %arg0, %c0_i32, %c0_i32_0 : i32, i32, i32
  }
}

</mosaic_0001>

<bundles_post_ra>
// kernel: tpu_custom_call.1
= control target key start
LH: loop header
LB: loop body
LE: loop exit
PB: predicated region body
PF: predicated region fallthrough
CT: control target
= control target key end

     0   :  { %10 = vsyncpa [#allocation3], 0  ;;  %s2199_s0 = inlined_call_operand.vmem [shape: f32[2,1,4,504], index: 0, kind: input, shape index: {}]   ;;  %s2200_s1 = inlined_call_operand.vmem [shape: f32[9,2,1], index: 1, kind: input, shape index: {}]   ;;  %s2201_s2 = inlined_call_operand.vmem [shape: f32[25,2,1], index: 2, kind: input, shape index: {}]   ;;  %s2202_s3 = inlined_call_operand.vmem [shape: f32[4,8,1], index: 3, kind: input, shape index: {}]   ;;  %s2203_s4 = inlined_call_operand.vmem [shape: f32[8,1], index: 4, kind: input, shape index: {}]   ;;  %s2204_s5 = inlined_call_operand.hbm [shape: f32[2,8,384], index: 5, kind: output, shape index: {}]  }
   0x1   :  { %12 = vsyncpa [#allocation3 + $0x1], 0  ;;  %s1685_s18 = smov 0   ;;  %s1687_s19 = smov 0  }
   0x2   :  { %s1689_s20 = smov 0   ;;  %s1691_s21 = smov 0  }
   0x3 LB: > { %s1706_s22 = sadd.s32 4294967295, %s1626_s21   ;;  %s1448_s23 = sadd.s32 4294967294, %s1626_s21   ;;  %s1626_s21 = sphi %s1691_s21, %s2210_s21   ;;  %s1622_s20 = sphi %s1689_s20, %s2209_s20   ;;  %s1618_s19 = sphi %s1687_s19, %s2208_s19   ;;  %s1614_s18 = sphi %s1685_s18, %s2207_s18  }
   0x4   : > { %s1710_s24 = sadd.s32 1, %s1626_s21   ;;  %s135_s25 = sadd.s32 1, %s1622_s20 }
   0x5   : > { %s132_s26 = ssub.s32 %s1626_s21, %s1710_s24  ;;  %p145_p0 = scmp.ne.s32.totalorder %s1622_s20, %s1618_s19 }
   0x6   : > { %p133_p1 = scmp.eq.s32.totalorder %s132_s26, 0  ;;  %p146_p2 = scmp.eq.s32.totalorder %s1706_s22, 1 }
   0x7   : > { %p151_p3 = scmp.ne.s32.totalorder %s1618_s19, %s1614_s18  ;;  %p152_p4 = scmp.eq.s32.totalorder %s1448_s23, 1 }
   0x8   : > { %s1721_s27 = scalar_select %p133_p1, %s1622_s20, %s135_s25  }
   0x9   : > { %p1723_p5 = por %p146_p2, %p145_p0  ;;  %p1727_p6 = por %p152_p4, %p151_p3 }
   0xa   : > { %p1451_p7 = scmp.ge.s32.totalorder %s1626_s21, 1  ;;  %p190_p8 = scmp.lt.s32.totalorder %s1626_s21, 3 }
   0xc   : > { %p191_p9 = pnand %p1451_p7, %p190_p8 }
   0xd   : > { %p218_p10 = scmp.lt.s32.totalorder (!%p191_p9), %s1706_s22, 1  ;;  %s1630_s14 = smov (!%p191_p9), 126  }
   0xe   : > { %194 = sbr.rel (%p191_p9) target bundleno = 885 (0x375), region = 40  ;;  %s1631_s17 = smov (!%p191_p9), 104  }
   0xf   : > { %s1632_s23 = smov (!%p191_p9), 103   ;;  %s1633_s25 = smov (!%p191_p9), 127  }
  0x10   : > { %s1634_s26 = smov (!%p191_p9), 102   ;;  %s1635_s7 = smov (!%p191_p9), 80  }
  0x11   : > { %s1636_s10 = smov (!%p191_p9), 79   ;;  %s1637_s15 = smov (!%p191_p9), 78  }
  0x12   : > { %s1638_s16 = smov (!%p191_p9), 125   ;;  %s1639_s6 = smov (!%p191_p9), 124  }
  0x13   : > { %v1456_v0 = vld [vmem:[%s2200_s1 + $0x6] sm:$0x3]  ;;  %v225_v1 = vld [vmem:[%s2200_s1] sm:$0x3]  ;;  %v1628_v2 = vmov 0   ;;  %v1462_v9 = vld [vmem:[%s2202_s3 + $0x8] sm:$0xff] }
  0x14   : > { %1563 = vset.pattern.permute.xlu1 %v1628_v2  ;;  %1561 = vset.pattern.permute.xlu0 %v1628_v2  ;;  %v1455_v3 = vld [vmem:[%s2200_s1 + $0x4] sm:$0x3]  ;;  %v1457_v4 = vld [vmem:[%s2200_s1 + $0x8] sm:$0x3]  ;;  %v1454_v5 = vld [vmem:[%s2200_s1 + $0x2] sm:$0x3] }
  0x15   : > { %302 = vperm.xlu1 %1563, %v1456_v0   ;;  %228 = vperm.xlu0 %1561, %v225_v1   ;;  %v1458_v6 = vld [vmem:[%s2200_s1 + $0xa] sm:$0x3]  ;;  %v529_v7 = vld [vmem:[%s2201_s2] sm:$0x3]  ;;  %v1459_v8 = vld [vmem:[%s2200_s1 + $0xc] sm:$0x3] }
  0x16   : > { %1562 = vset.pattern.permute.xlu2 %v1628_v2  ;;  %v1460_v10 = vld [vmem:[%s2200_s1 + $0xe] sm:$0x3]  ;;  %v1461_v11 = vld [vmem:[%s2200_s1 + $0x10] sm:$0x3]  ;;  %v472_v12 = vld [vmem:[%s2202_s3] sm:$0xff]  ;;  %s219_s30 = scalar_select %p218_p10, %s1706_s22, 1 }
  0x17   : > { %273 = vperm.xlu2 %1562, %v1455_v3   ;;  %v1463_v13 = vld [vmem:[%s2201_s2 + $0x2] sm:$0x3]  ;;  %v1464_v14 = vld [vmem:[%s2201_s2 + $0x4] sm:$0x3]  ;;  %v1465_v15 = vld [vmem:[%s2201_s2 + $0x6] sm:$0x3] }
  0x18   : > { %v1466_v16 = vld [vmem:[%s2201_s2 + $0x8] sm:$0x3]  ;;  %v1467_v17 = vld [vmem:[%s2201_s2 + $0xa] sm:$0x3]  ;;  %v1629_v18 = vmov 839922192  }
  0x19   : > { %v231_v19 = vunpack.c.l.s4 %v1629_v18  ;;  %s1492_s8 = sshll.u32 %s219_s30, 4  ;;  %v1468_v24 = vld [vmem:[%s2201_s2 + $0xc] sm:$0x3]  ;;  %v1469_v28 = vld [vmem:[%s2201_s2 + $0xe] sm:$0x3]  ;;  %vm291_vm0 = vcmask 1031168  }
  0x1a   : > { %s1791_s11 = scalar_lea.vmem %s2199_s0, %s1492_s8  ;;  %v1470_v53 = vld [vmem:[%s2201_s2 + $0x10] sm:$0x3]  ;;  %v1471_v58 = vld [vmem:[%s2201_s2 + $0x12] sm:$0x3]  ;;  %v1472_v63 = vld [vmem:[%s2201_s2 + $0x14] sm:$0x3] }
  0x1b   : > { %v1786_v20 = vunpack.c.0.s8 %v231_v19  ;;  %v1794_v22 = vld [vmem:[%s1791_s11] sm:$0x33]  ;;  %v1797_v23 = vld [vmem:[%s1791_s11 + $0x8] sm:$0x33]  ;;  %v1473_v1 = vld [vmem:[%s2201_s2 + $0x16] sm:$0x3] }
  0x1c   : > { %v1481_v19 = vld [vmem:[%s2201_s2 + $0x26] sm:$0x3]  ;;  %vm260_vm1 = vcmask 1043456   ;;  %vm320_vm2 = vcmask 850944   ;;  %vm349_vm3 = vcmask 842752   ;;  %vm378_vm4 = vcmask 834560  }
  0x1d   : > { %331 = vperm.xlu1 %1563, %v1457_v4   ;;  %243 = vperm.xlu0 %1561, %v1454_v5   ;;  %v1868_v4 = vld [vmem:[%s1791_s11] sm:$0xcc]  ;;  %v1871_v5 = vld [vmem:[%s1791_s11 + $0x8] sm:$0xcc]  ;;  %vm262_vm5 = vcmask 1039360   ;;  %vm407_vm6 = vcmask 654336  }
  0x1e   : > { %vm436_vm7 = vcmask 646144   ;;  %vm465_vm8 = vcmask 637952   ;;  %vm627_vm9 = vcmask 1022976   ;;  %vm657_vm10 = vcmask 1014784   ;;  %s1644_s13 = smov 55   ;;  %s1648_s30 = smov 32  }
  0x1f   : > { %516 = vperm.xlu2 %1562, %v1462_v9   ;;  %vm774_vm11 = vcmask 826368   ;;  %vm804_vm12 = vcmask 818176   ;;  %s1652_s9 = smov 31   ;;  %vm921_vm13 = vcmask 629760   ;;  %vm951_vm14 = vcmask 621568  }
  0x20   : > { %vm981_vm15 = vcmask 457728  }
  0x25   : > { %360 = vperm.xlu1 %1563, %v1458_v6   ;;  %532 = vperm.xlu0 %1561, %v529_v7   ;;  %v1475_v7 = vld [vmem:[%s2201_s2 + $0x1a] sm:$0x3] }
  0x2d   : > { %389 = vperm.xlu1 %1563, %v1459_v8  }
  0x35   : > { %418 = vperm.xlu1 %1563, %v1460_v10  }
  0x3d   : > { %447 = vperm.xlu1 %1563, %v1461_v11  }
  0x45   : > { %489 = vperm.xlu1 %1563, %v472_v12  }
  0x4d   : > { %550 = vperm.xlu1 %1563, %v1463_v13   ;;  %v1478_v13 = vld [vmem:[%s2201_s2 + $0x20] sm:$0x3] }
  0x55   : > { %579 = vperm.xlu1 %1563, %v1464_v14  }
  0x5d   : > { %608 = vperm.xlu1 %1563, %v1465_v15  }
  0x65   : > { %638 = vperm.xlu1 %1563, %v1466_v16  }
  0x6d   : > { %668 = vperm.xlu1 %1563, %v1467_v17  }
  0x71   : > { %v274_v21 = vpop.permute.xlu2 %273 }
  0x72   : > { %v278_v25 = vperm.slane %v274_v21, %v1786_v20 }
  0x74   : > { %v280_v26 = vmul.f32 %v278_v25, %v1794_v22  ;;  %v281_v27 = vmul.f32 %v278_v25, %v1797_v23 }
  0x75   : > { %697 = vperm.xlu1 %1563, %v1468_v24  }
  0x76   : > { %286 = vrot.lane.b32.xlu0 %v281_v27, %s1630_s14  ;;  %284 = vrot.lane.b32.xlu2 %v280_v26, %s1630_s14  ;;  %v1484_v26 = vld [vmem:[%s2201_s2 + $0x2c] sm:$0x3] }
  0x7d   : > { %726 = vperm.xlu1 %1563, %v1469_v28  }
  0x87   : > { %v303_v29 = vpop.permute.xlu1 %302  ;;  %v229_v30 = vpop.permute.xlu0 %228 }
  0x88   : > { %v307_v31 = vperm.slane %v303_v29, %v1786_v20  ;;  %v233_v32 = vperm.slane %v229_v30, %v1786_v20  ;;  %v1900_v29 = vpop.permute.xlu2 %516 }
  0x8a   : > { %v309_v33 = vmul.f32 %v307_v31, %v1794_v22  ;;  %v310_v34 = vmul.f32 %v307_v31, %v1797_v23  ;;  %v1815_v35 = vmul.f32 %v233_v32, %v1794_v22  ;;  %v1818_v36 = vmul.f32 %v233_v32, %v1797_v23 }
  0x8c   : > { %315 = vrot.lane.b32.xlu0 %v310_v34, %s1631_s17  ;;  %313 = vrot.lane.b32.xlu2 %v309_v33, %s1631_s17 }
  0x8f   : > { %v332_v37 = vpop.permute.xlu1 %331  ;;  %v244_v38 = vpop.permute.xlu0 %243 }
  0x90   : > { %v336_v39 = vperm.slane %v332_v37, %v1786_v20  ;;  %v248_v40 = vperm.slane %v244_v38, %v1786_v20 }
  0x92   : > { %v338_v41 = vmul.f32 %v336_v39, %v1794_v22  ;;  %v339_v42 = vmul.f32 %v336_v39, %v1797_v23  ;;  %v250_v43 = vmul.f32 %v248_v40, %v1794_v22  ;;  %v251_v48 = vmul.f32 %v248_v40, %v1797_v23 }
  0x94   : > { %344 = vrot.lane.b32.xlu0 %v339_v42, %s1632_s23  ;;  %342 = vrot.lane.b32.xlu2 %v338_v41, %s1632_s23 }
  0x95   : > { %254 = vrot.lane.b32.xlu1 %v250_v43, %s1633_s25 }
  0x97   : > { %v361_v44 = vpop.permute.xlu1 %360  ;;  %v1902_v31 = vpop.permute.xlu0 %532 }
  0x98   : > { %v365_v45 = vperm.slane %v361_v44, %v1786_v20 }
  0x9a   : > { %v367_v46 = vmul.f32 %v365_v45, %v1794_v22  ;;  %v368_v47 = vmul.f32 %v365_v45, %v1797_v23 }
  0x9c   : > { %373 = vrot.lane.b32.xlu0 %v368_v47, %s1634_s26  ;;  %371 = vrot.lane.b32.xlu2 %v367_v46, %s1634_s26 }
  0x9d   : > { %256 = vrot.lane.b32.xlu1 %v251_v48, %s1633_s25 }
  0x9f   : > { %v390_v49 = vpop.permute.xlu1 %389 }
  0xa0   : > { %v394_v50 = vperm.slane %v390_v49, %v1786_v20 }
  0xa2   : > { %v396_v51 = vmul.f32 %v394_v50, %v1794_v22  ;;  %v397_v52 = vmul.f32 %v394_v50, %v1797_v23 }
  0xa4   : > { %402 = vrot.lane.b32.xlu0 %v397_v52, %s1635_s7  ;;  %400 = vrot.lane.b32.xlu2 %v396_v51, %s1635_s7 }
  0xa5   : > { %755 = vperm.xlu1 %1563, %v1470_v53  }
  0xa7   : > { %v419_v54 = vpop.permute.xlu1 %418 }
  0xa8   : > { %v423_v55 = vperm.slane %v419_v54, %v1786_v20 }
  0xaa   : > { %v425_v56 = vmul.f32 %v423_v55, %v1794_v22  ;;  %v426_v57 = vmul.f32 %v423_v55, %v1797_v23 }
  0xac   : > { %431 = vrot.lane.b32.xlu0 %v426_v57, %s1636_s10  ;;  %429 = vrot.lane.b32.xlu2 %v425_v56, %s1636_s10 }
  0xad   : > { %785 = vperm.xlu1 %1563, %v1471_v58  }
  0xaf   : > { %v448_v59 = vpop.permute.xlu1 %447 }
  0xb0   : > { %v452_v60 = vperm.slane %v448_v59, %v1786_v20 }
  0xb2   : > { %v454_v61 = vmul.f32 %v452_v60, %v1794_v22  ;;  %v455_v62 = vmul.f32 %v452_v60, %v1797_v23 }
  0xb4   : > { %460 = vrot.lane.b32.xlu0 %v455_v62, %s1637_s15  ;;  %458 = vrot.lane.b32.xlu2 %v454_v61, %s1637_s15 }
  0xb5   : > { %815 = vperm.xlu1 %1563, %v1472_v63  }
  0xb7   : > { %v1861_v0 = vpop.permute.xlu1 %489 }
  0xbd   : > { %844 = vperm.xlu1 %1563, %v1473_v1  }
  0xbf   : > { %v551_v2 = vpop.permute.xlu1 %550 }
  0xc0   : > { %v555_v3 = vperm.slane %v551_v2, %v1786_v20 }
  0xc2   : > { %v556_v6 = vrot.slane %v555_v3, 6 }
  0xc4   : > { %v558_v8 = vmul.f32 %v556_v6, %v1868_v4  ;;  %v559_v9 = vmul.f32 %v556_v6, %v1871_v5 }
  0xc5   : > { %902 = vperm.xlu1 %1563, %v1475_v7  }
  0xc6   : > { %564 = vrot.lane.b32.xlu0 %v559_v9, %s1633_s25  ;;  %562 = vrot.lane.b32.xlu2 %v558_v8, %s1633_s25  ;;  %s1642_s25 = smov 77  }
  0xc7   : > { %v580_v10 = vpop.permute.xlu1 %579 }
  0xc8   : > { %v584_v11 = vperm.slane %v580_v10, %v1786_v20 }
  0xca   : > { %v585_v12 = vrot.slane %v584_v11, 6 }
  0xcc   : > { %v587_v14 = vmul.f32 %v585_v12, %v1868_v4  ;;  %v588_v15 = vmul.f32 %v585_v12, %v1871_v5 }
  0xcd   : > { %992 = vperm.xlu1 %1563, %v1478_v13  }
  0xce   : > { %593 = vrot.lane.b32.xlu0 %v588_v15, %s1630_s14  ;;  %591 = vrot.lane.b32.xlu2 %v587_v14, %s1630_s14  ;;  %s1647_s14 = smov 56  }
  0xcf   : > { %v609_v16 = vpop.permute.xlu1 %608 }
  0xd0   : > { %v613_v17 = vperm.slane %v609_v16, %v1786_v20  ;;  %v285_v38 = vpop.permute.xlu2 %284 }
  0xd1   : > { %v288_v39 = vrot.slane %v285_v38, 4 }
  0xd2   : > { %v614_v18 = vrot.slane %v613_v17, 6 }
  0xd4   : > { %v616_v21 = vmul.f32 %v614_v18, %v1868_v4  ;;  %v617_v22 = vmul.f32 %v614_v18, %v1871_v5 }
  0xd5   : > { %1082 = vperm.xlu1 %1563, %v1481_v19  }
  0xd6   : > { %622 = vrot.lane.b32.xlu0 %v617_v22, %s1638_s16  ;;  %620 = vrot.lane.b32.xlu2 %v616_v21, %s1638_s16  ;;  %s1645_s16 = smov 54  }
  0xd7   : > { %v639_v23 = vpop.permute.xlu1 %638 }
  0xd8   : > { %v643_v24 = vperm.slane %v639_v23, %v1786_v20 }
  0xda   : > { %v644_v25 = vrot.slane %v643_v24, 6 }
  0xdc   : > { %v646_v27 = vmul.f32 %v644_v25, %v1868_v4  ;;  %v647_v28 = vmul.f32 %v644_v25, %v1871_v5 }
  0xdd   : > { %1172 = vperm.xlu1 %1563, %v1484_v26  }
  0xde   : > { %652 = vrot.lane.b32.xlu0 %v647_v28, %s1639_s6  ;;  %650 = vrot.lane.b32.xlu2 %v646_v27, %s1639_s6  ;;  %s1650_s6 = smov 53  }
  0xdf   : > { %v669_v30 = vpop.permute.xlu1 %668 }
  0xe0   : > { %v673_v32 = vperm.slane %v669_v30, %v1786_v20 }
  0xe2   : > { %v674_v33 = vrot.slane %v673_v32, 6 }
  0xe4   : > { %v676_v34 = vmul.f32 %v674_v33, %v1868_v4  ;;  %v677_v37 = vmul.f32 %v674_v33, %v1871_v5 }
  0xe6   : > { %682 = vrot.lane.b32.xlu0 %v677_v37, %s1631_s17  ;;  %680 = vrot.lane.b32.xlu2 %v676_v34, %s1631_s17  ;;  %v314_v50 = vpop.permute.xlu2 %313  ;;  %s1640_s17 = smov 101  }
  0xe7   : > { %v698_v40 = vpop.permute.xlu1 %697  ;;  %v317_v57 = vrot.slane %v314_v50, 4 }
  0xe8   : > { %v702_v41 = vperm.slane %v698_v40, %v1786_v20  ;;  %v287_v42 = vpop.permute.xlu0 %286 }
  0xe9   : > { %v289_v43 = vrot.slane %v287_v42, 4 }
  0xea   : > { %v703_v44 = vrot.slane %v702_v41, 6 }
  0xeb   : > { %v290_v45 = vsel %vm260_vm1, %v288_v39, %v289_v43  ;;  %v293_v15 = vsel %vm291_vm0, %v287_v42, %v289_v43 }
  0xec   : > { %v705_v46 = vmul.f32 %v703_v44, %v1868_v4  ;;  %v706_v47 = vmul.f32 %v703_v44, %v1871_v5  ;;  %v292_v48 = vsel %vm291_vm0, %v285_v38, %v290_v45 }
  0xee   : > { %711 = vrot.lane.b32.xlu0 %v706_v47, %s1632_s23  ;;  %709 = vrot.lane.b32.xlu2 %v705_v46, %s1632_s23  ;;  %v343_v55 = vpop.permute.xlu2 %342 }
  0xef   : > { %v727_v49 = vpop.permute.xlu1 %726  ;;  %v346_v63 = vrot.slane %v343_v55, 4 }
  0xf0   : > { %v731_v51 = vperm.slane %v727_v49, %v1786_v20 }
  0xf2   : > { %v732_v52 = vrot.slane %v731_v51, 6 }
  0xf4   : > { %v734_v53 = vmul.f32 %v732_v52, %v1868_v4  ;;  %v735_v54 = vmul.f32 %v732_v52, %v1871_v5 }
  0xf6   : > { %740 = vrot.lane.b32.xlu0 %v735_v54, %s1634_s26  ;;  %738 = vrot.lane.b32.xlu2 %v734_v53, %s1634_s26  ;;  %v372_v61 = vpop.permute.xlu2 %371  ;;  %s1641_s26 = smov 100  }
  0xf7   : > { %v375_v9 = vrot.slane %v372_v61, 4 }
  0xfe   : > { %v316_v56 = vpop.permute.xlu0 %315  ;;  %v401_v7 = vpop.permute.xlu2 %400 }
  0xff   : > { %v318_v58 = vrot.slane %v316_v56, 4  ;;  %v404_v27 = vrot.slane %v401_v7, 4 }
 0x101   : > { %v319_v59 = vsel %vm260_vm1, %v317_v57, %v318_v58  ;;  %v322_v24 = vsel %vm320_vm2, %v316_v56, %v318_v58 }
 0x102   : > { %v321_v60 = vsel %vm320_vm2, %v314_v50, %v319_v59 }
 0x106   : > { %v345_v62 = vpop.permute.xlu0 %344  ;;  %v430_v34 = vpop.permute.xlu2 %429 }
 0x107   : > { %v347_v1 = vrot.slane %v345_v62, 4  ;;  %v255_v2 = vpop.permute.xlu1 %254  ;;  %v433_v51 = vrot.slane %v430_v34, 4 }
 0x108   : > { %v258_v12 = vrot.slane %v255_v2, 4 }
 0x109   : > { %v348_v3 = vsel %vm260_vm1, %v346_v63, %v347_v1  ;;  %v351_v33 = vsel %vm349_vm3, %v345_v62, %v347_v1 }
 0x10a   : > { %v350_v6 = vsel %vm349_vm3, %v343_v55, %v348_v3 }
 0x10e   : > { %v374_v8 = vpop.permute.xlu0 %373  ;;  %v459_v57 = vpop.permute.xlu2 %458 }
 0x10f   : > { %v376_v10 = vrot.slane %v374_v8, 4  ;;  %v257_v11 = vpop.permute.xlu1 %256 }
 0x110   : > { %v259_v13 = vrot.slane %v257_v11, 4 }
 0x111   : > { %v377_v14 = vsel %vm260_vm1, %v375_v9, %v376_v10 }
 0x112   : > { %v379_v16 = vsel %vm378_vm4, %v372_v61, %v377_v14  ;;  %v261_v17 = vsel %vm260_vm1, %v258_v12, %v259_v13  ;;  %v264_v18 = vsel %vm262_vm5, %v257_v11, %v259_v13 }
 0x113   : > { %v263_v19 = vsel %vm262_vm5, %v255_v2, %v261_v17  ;;  %v268_v21 = vadd.f32 %v264_v18, %v1818_v36  ;;  %v462_v2 = vrot.slane %v459_v57, 4 }
 0x114   : > { %v267_v22 = vadd.f32 %v263_v19, %v1815_v35  ;;  %v380_v35 = vsel %vm378_vm4, %v374_v8, %v376_v10  ;;  %v537_v19 = vperm.slane %v1902_v31, %v1786_v20 }
 0x115   : > { %v297_v23 = vadd.f32 %v293_v15, %v268_v21 }
 0x116   : > { %v296_v25 = vadd.f32 %v292_v48, %v267_v22  ;;  %v403_v26 = vpop.permute.xlu0 %402  ;;  %v1474_v22 = vld [vmem:[%s2201_s2 + $0x18] sm:$0x3] }
 0x117   : > { %v326_v28 = vadd.f32 %v322_v24, %v297_v23  ;;  %v405_v30 = vrot.slane %v403_v26, 4  ;;  %v756_v32 = vpop.permute.xlu1 %755 }
 0x118   : > { %v325_v37 = vadd.f32 %v321_v60, %v296_v25  ;;  %v760_v38 = vperm.slane %v756_v32, %v1786_v20 }
 0x119   : > { %v355_v39 = vadd.f32 %v351_v33, %v326_v28  ;;  %v406_v36 = vsel %vm260_vm1, %v404_v27, %v405_v30  ;;  %v409_v45 = vsel %vm407_vm6, %v403_v26, %v405_v30  ;;  %v538_v26 = vrot.slane %v537_v19, 6  ;;  %v528_v27 = vld [vmem:[%s1791_s11 + $0x8] sm:$0xc]  ;;  %v527_v30 = vld [vmem:[%s1791_s11] sm:$0xcc] }
 0x11a   : > { %v354_v40 = vadd.f32 %v350_v6, %v325_v37  ;;  %v408_v41 = vsel %vm407_vm6, %v401_v7, %v406_v36  ;;  %v761_v42 = vrot.slane %v760_v38, 6 }
 0x11b   : > { %v384_v43 = vadd.f32 %v380_v35, %v355_v39  ;;  %v541_v37 = vmul.f32 %v538_v26, %v528_v27  ;;  %v540_v39 = vmul.f32 %v538_v26, %v527_v30 }
 0x11c   : > { %v383_v44 = vadd.f32 %v379_v16, %v354_v40  ;;  %v763_v46 = vmul.f32 %v761_v42, %v1868_v4  ;;  %v764_v47 = vmul.f32 %v761_v42, %v1871_v5  ;;  %v1477_v40 = vld [vmem:[%s2201_s2 + $0x1e] sm:$0x3] }
 0x11d   : > { %v413_v48 = vadd.f32 %v409_v45, %v384_v43 }
 0x11e   : > { %v412_v49 = vadd.f32 %v408_v41, %v383_v44  ;;  %769 = vrot.lane.b32.xlu0 %v764_v47, %s1640_s17  ;;  %767 = vrot.lane.b32.xlu2 %v763_v46, %s1640_s17  ;;  %v432_v50 = vpop.permute.xlu0 %431  ;;  %v1476_v44 = vld [vmem:[%s2201_s2 + $0x1c] sm:$0x3]  ;;  %s1651_s17 = smov 29  }
 0x11f   : > { %v434_v52 = vrot.slane %v432_v50, 4  ;;  %v786_v53 = vpop.permute.xlu1 %785 }
 0x120   : > { %v790_v54 = vperm.slane %v786_v53, %v1786_v20  ;;  %v563_v10 = vpop.permute.xlu2 %562 }
 0x121   : > { %v435_v55 = vsel %vm260_vm1, %v433_v51, %v434_v52  ;;  %v438_v56 = vsel %vm436_vm7, %v432_v50, %v434_v52  ;;  %v566_v33 = vrot.slane %v563_v10, 4  ;;  %v1480_v52 = vld [vmem:[%s2201_s2 + $0x24] sm:$0x3] }
 0x122   : > { %v437_v58 = vsel %vm436_vm7, %v430_v34, %v435_v55  ;;  %v442_v59 = vadd.f32 %v438_v56, %v413_v48  ;;  %v791_v60 = vrot.slane %v790_v54, 6  ;;  %v1479_v55 = vld [vmem:[%s2201_s2 + $0x22] sm:$0x3] }
 0x123   : > { %v441_v61 = vadd.f32 %v437_v58, %v412_v49 }
 0x124   : > { %v793_v62 = vmul.f32 %v791_v60, %v1868_v4  ;;  %v794_v63 = vmul.f32 %v791_v60, %v1871_v5 }
 0x126   : > { %799 = vrot.lane.b32.xlu0 %v794_v63, %s1641_s26  ;;  %797 = vrot.lane.b32.xlu2 %v793_v62, %s1641_s26  ;;  %v461_v1 = vpop.permute.xlu0 %460  ;;  %v1483_v63 = vld [vmem:[%s2201_s2 + $0x2a] sm:$0x3] }
 0x127   : > { %v463_v3 = vrot.slane %v461_v1, 4  ;;  %v816_v6 = vpop.permute.xlu1 %815 }
 0x128   : > { %v820_v7 = vperm.slane %v816_v6, %v1786_v20  ;;  %v592_v23 = vpop.permute.xlu2 %591 }
 0x129   : > { %v464_v8 = vsel %vm260_vm1, %v462_v2, %v463_v3  ;;  %v467_v9 = vsel %vm465_vm8, %v461_v1, %v463_v3  ;;  %v595_v48 = vrot.slane %v592_v23, 4  ;;  %v1482_v3 = vld [vmem:[%s2201_s2 + $0x28] sm:$0x3] }
 0x12a   : > { %v466_v11 = vsel %vm465_vm8, %v459_v57, %v464_v8  ;;  %v1952_v12 = vadd.f32 %v467_v9, %v442_v59  ;;  %v821_v13 = vrot.slane %v820_v7, 6 }
 0x12b   : > { %v1954_v14 = vadd.f32 %v466_v11, %v441_v61 }
 0x12c   : > { %v823_v15 = vmul.f32 %v821_v13, %v1868_v4  ;;  %v824_v16 = vmul.f32 %v821_v13, %v1871_v5 }
 0x12e   : > { %829 = vrot.lane.b32.xlu0 %v824_v16, %s1635_s7  ;;  %827 = vrot.lane.b32.xlu2 %v823_v15, %s1635_s7  ;;  %v1486_v15 = vld [vmem:[%s2201_s2 + $0x30] sm:$0x3]  ;;  %s1653_s7 = smov 28  }
 0x12f   : > { %v845_v17 = vpop.permute.xlu1 %844 }
 0x130   : > { %v849_v18 = vperm.slane %v845_v17, %v1786_v20  ;;  %v621_v46 = vpop.permute.xlu2 %620 }
 0x131   : > { %v624_v59 = vrot.slane %v621_v46, 4 }
 0x132   : > { %v850_v21 = vrot.slane %v849_v18, 6  ;;  %v1485_v18 = vld [vmem:[%s2201_s2 + $0x2e] sm:$0x3] }
 0x134   : > { %v852_v24 = vmul.f32 %v850_v21, %v1868_v4  ;;  %v853_v25 = vmul.f32 %v850_v21, %v1871_v5 }
 0x136   : > { %873 = vperm.xlu0 %1561, %v1474_v22   ;;  %858 = vrot.lane.b32.xlu1 %v853_v25, %s1636_s10 }
 0x137   : > { %856 = vrot.lane.b32.xlu2 %v852_v24, %s1636_s10  ;;  %v903_v28 = vpop.permute.xlu1 %902  ;;  %s1643_s10 = smov 76  }
 0x138   : > { %v907_v31 = vperm.slane %v903_v28, %v1786_v20  ;;  %v565_v32 = vpop.permute.xlu0 %564  ;;  %v651_v57 = vpop.permute.xlu2 %650 }
 0x139   : > { %v567_v34 = vrot.slane %v565_v32, 4  ;;  %v654_v8 = vrot.slane %v651_v57, 4 }
 0x13a   : > { %v1973_v38 = vrot.slane %v907_v31, 6 }
 0x13b   : > { %v568_v36 = vsel %vm260_vm1, %v566_v33, %v567_v34  ;;  %v570_v35 = vsel %vm262_vm5, %v565_v32, %v567_v34 }
 0x13c   : > { %v910_v41 = vmul.f32 %v1973_v38, %v1868_v4  ;;  %v569_v42 = vsel %vm262_vm5, %v563_v10, %v568_v36  ;;  %v574_v43 = vadd.f32 %v570_v35, %v541_v37  ;;  %vm1101_vm5 = vcmask 424960  }
 0x13d   : > { %v573_v45 = vadd.f32 %v569_v42, %v540_v39 }
 0x13e   : > { %962 = vperm.xlu0 %1561, %v1477_v40   ;;  %914 = vrot.lane.b32.xlu1 %v910_v41, %s1642_s25 }
 0x13f   : > { %932 = vperm.xlu2 %1562, %v1476_v44  }
 0x140   : > { %v594_v47 = vpop.permute.xlu0 %593  ;;  %v681_v10 = vpop.permute.xlu2 %680 }
 0x141   : > { %v596_v49 = vrot.slane %v594_v47, 4  ;;  %v684_v22 = vrot.slane %v681_v10, 4 }
 0x143   : > { %v597_v50 = vsel %vm260_vm1, %v595_v48, %v596_v49  ;;  %v599_v51 = vsel %vm291_vm0, %v594_v47, %v596_v49 }
 0x144   : > { %v598_v53 = vsel %vm291_vm0, %v592_v23, %v597_v50  ;;  %v603_v54 = vadd.f32 %v599_v51, %v574_v43  ;;  %vm1011_vm0 = vcmask 449536  }
 0x145   : > { %v602_v56 = vadd.f32 %v598_v53, %v573_v45 }
 0x146   : > { %1052 = vperm.xlu0 %1561, %v1480_v52   ;;  %v993_v52 = vpop.permute.xlu1 %992 }
 0x147   : > { %1022 = vperm.xlu2 %1562, %v1479_v55  }
 0x148   : > { %v623_v58 = vpop.permute.xlu0 %622  ;;  %v710_v26 = vpop.permute.xlu2 %709 }
 0x149   : > { %v625_v60 = vrot.slane %v623_v58, 4  ;;  %v713_v32 = vrot.slane %v710_v26, 4 }
 0x14b   : > { %v626_v61 = vsel %vm260_vm1, %v624_v59, %v625_v60  ;;  %v629_v62 = vsel %vm627_vm9, %v623_v58, %v625_v60 }
 0x14c   : > { %v628_v1 = vsel %vm627_vm9, %v621_v46, %v626_v61  ;;  %v633_v2 = vadd.f32 %v629_v62, %v603_v54  ;;  %vm1221_vm9 = vcmask 236544  }
 0x14d   : > { %v632_v6 = vadd.f32 %v628_v1, %v602_v56 }
 0x14e   : > { %1142 = vperm.xlu0 %1561, %v1483_v63   ;;  %v1083_v62 = vpop.permute.xlu1 %1082 }
 0x14f   : > { %1112 = vperm.xlu2 %1562, %v1482_v3  }
 0x150   : > { %v653_v7 = vpop.permute.xlu0 %652  ;;  %v739_v40 = vpop.permute.xlu2 %738 }
 0x151   : > { %v655_v9 = vrot.slane %v653_v7, 4  ;;  %v742_v42 = vrot.slane %v739_v40, 4 }
 0x153   : > { %v656_v11 = vsel %vm260_vm1, %v654_v8, %v655_v9  ;;  %v659_v13 = vsel %vm657_vm10, %v653_v7, %v655_v9 }
 0x154   : > { %v658_v16 = vsel %vm657_vm10, %v651_v57, %v656_v11  ;;  %v663_v17 = vadd.f32 %v659_v13, %v633_v2  ;;  %vm1251_vm10 = vcmask 228352  }
 0x155   : > { %v662_v19 = vadd.f32 %v658_v16, %v632_v6 }
 0x156   : > { %1232 = vperm.xlu0 %1561, %v1486_v15   ;;  %v997_v15 = vperm.slane %v993_v52, %v1786_v20 }
 0x157   : > { %1202 = vperm.xlu2 %1562, %v1485_v18  }
 0x158   : > { %v683_v21 = vpop.permute.xlu0 %682 }
 0x159   : > { %v685_v23 = vrot.slane %v683_v21, 4 }
 0x15b   : > { %v686_v24 = vsel %vm260_vm1, %v684_v22, %v685_v23  ;;  %v688_v25 = vsel %vm320_vm2, %v683_v21, %v685_v23  ;;  %v998_v22 = vrot.slane %v997_v15, 6 }
 0x15c   : > { %v687_v27 = vsel %vm320_vm2, %v681_v10, %v686_v24  ;;  %v692_v28 = vadd.f32 %v688_v25, %v663_v17  ;;  %v1173_v17 = vpop.permute.xlu1 %1172  ;;  %vm1041_vm2 = vcmask 441344  }
 0x15d   : > { %v691_v30 = vadd.f32 %v687_v27, %v662_v19 }
 0x160   : > { %v712_v31 = vpop.permute.xlu0 %711 }
 0x161   : > { %v714_v33 = vrot.slane %v712_v31, 4 }
 0x163   : > { %v715_v34 = vsel %vm260_vm1, %v713_v32, %v714_v33  ;;  %v717_v37 = vsel %vm349_vm3, %v712_v31, %v714_v33 }
 0x164   : > { %v716_v39 = vsel %vm349_vm3, %v710_v26, %v715_v34  ;;  %v721_v36 = vadd.f32 %v717_v37, %v692_v28 }
 0x165   : > { %v720_v35 = vadd.f32 %v716_v39, %v691_v30  ;;  %v1000_v30 = vmul.f32 %v998_v22, %v1868_v4 }
 0x168   : > { %v741_v41 = vpop.permute.xlu0 %740 }
 0x169   : > { %v743_v43 = vrot.slane %v741_v41, 4 }
 0x16b   : > { %v744_v44 = vsel %vm260_vm1, %v742_v42, %v743_v43  ;;  %v746_v45 = vsel %vm378_vm4, %v741_v41, %v743_v43 }
 0x16c   : > { %v745_v46 = vsel %vm378_vm4, %v739_v40, %v744_v44  ;;  %v750_v47 = vadd.f32 %v746_v45, %v721_v36  ;;  %v1087_v45 = vperm.slane %v1083_v62, %v1786_v20  ;;  %vm1071_vm4 = vcmask 433152  }
 0x16d   : > { %v749_v48 = vadd.f32 %v745_v46, %v720_v35 }
 0x178   : > { %v768_v49 = vpop.permute.xlu2 %767 }
 0x179   : > { %v771_v54 = vrot.slane %v768_v49, 4 }
 0x180   : > { %v798_v50 = vpop.permute.xlu2 %797 }
 0x181   : > { %v801_v1 = vrot.slane %v798_v50, 4 }
 0x188   : > { %v828_v51 = vpop.permute.xlu2 %827 }
 0x189   : > { %v831_v19 = vrot.slane %v828_v51, 4 }
 0x190   : > { %v770_v53 = vpop.permute.xlu0 %769 }
 0x191   : > { %v772_v55 = vrot.slane %v770_v53, 4  ;;  %v857_v56 = vpop.permute.xlu2 %856 }
 0x192   : > { %v860_v34 = vrot.slane %v857_v56, 4 }
 0x193   : > { %v773_v57 = vsel %vm260_vm1, %v771_v54, %v772_v55  ;;  %v776_v58 = vsel %vm774_vm11, %v770_v53, %v772_v55 }
 0x194   : > { %v775_v59 = vsel %vm774_vm11, %v768_v49, %v773_v57  ;;  %v780_v60 = vadd.f32 %v776_v58, %v750_v47  ;;  %v1088_v47 = vrot.slane %v1087_v45, 6  ;;  %v1177_v58 = vperm.slane %v1173_v17, %v1786_v20 }
 0x195   : > { %v779_v61 = vadd.f32 %v775_v59, %v749_v48 }
 0x196   : > { %v1090_v53 = vmul.f32 %v1088_v47, %v1868_v4  ;;  %v1091_v15 = vmul.f32 %v1088_v47, %v1871_v5 }
 0x198   : > { %v800_v63 = vpop.permute.xlu0 %799 }
 0x199   : > { %v802_v2 = vrot.slane %v800_v63, 4  ;;  %v933_v3 = vpop.permute.xlu2 %932 }
 0x19a   : > { %v937_v6 = vperm.slane %v933_v3, %v1786_v20 }
 0x19b   : > { %v803_v7 = vsel %vm260_vm1, %v801_v1, %v802_v2  ;;  %v806_v8 = vsel %vm804_vm12, %v800_v63, %v802_v2  ;;  %v1001_v63 = vmul.f32 %v998_v22, %v1871_v5 }
 0x19c   : > { %v805_v9 = vsel %vm804_vm12, %v798_v50, %v803_v7  ;;  %v810_v10 = vadd.f32 %v806_v8, %v780_v60  ;;  %v938_v11 = vrot.slane %v937_v6, 6  ;;  %v911_v50 = vmul.f32 %v1973_v38, %v1871_v5 }
 0x19d   : > { %v809_v13 = vadd.f32 %v805_v9, %v779_v61  ;;  %v1178_v60 = vrot.slane %v1177_v58, 6 }
 0x19e   : > { %v941_v16 = vmul.f32 %v938_v11, %v1871_v5 }
 0x19f   : > { %v1180_v3 = vmul.f32 %v1178_v60, %v1868_v4 }
 0x1a0   : > { %946 = vrot.lane.b32.xlu1 %v941_v16, %s1643_s10  ;;  %v830_v18 = vpop.permute.xlu0 %829 }
 0x1a1   : > { %v832_v21 = vrot.slane %v830_v18, 4  ;;  %v1023_v25 = vpop.permute.xlu2 %1022 }
 0x1a2   : > { %v1027_v31 = vperm.slane %v1023_v25, %v1786_v20 }
 0x1a3   : > { %v833_v23 = vsel %vm260_vm1, %v831_v19, %v832_v21  ;;  %v835_v24 = vsel %vm407_vm6, %v830_v18, %v832_v21  ;;  %v1487_v18 = vld [vmem:[%s2202_s3 + $0x10] sm:$0xff] }
 0x1a4   : > { %v834_v26 = vsel %vm407_vm6, %v828_v51, %v833_v23  ;;  %v2028_v27 = vadd.f32 %v835_v24, %v810_v10  ;;  %v1028_v36 = vrot.slane %v1027_v31, 6  ;;  %v940_v51 = vmul.f32 %v938_v11, %v1868_v4 }
 0x1a5   : > { %v838_v28 = vadd.f32 %v834_v26, %v809_v13  ;;  %v1181_v24 = vmul.f32 %v1178_v60, %v1871_v5  ;;  %vm1131_vm6 = vcmask 261120  }
 0x1a6   : > { %v1031_v46 = vmul.f32 %v1028_v36, %v1871_v5  ;;  %v1030_v1 = vmul.f32 %v1028_v36, %v1868_v4 }
 0x1a8   : > { %1004 = vrot.lane.b32.xlu1 %v1000_v30, %s1644_s13  ;;  %v874_v32 = vpop.permute.xlu0 %873  ;;  %v2033_v33 = vpop.permute.xlu1 %858 }
 0x1a9   : > { %v878_v37 = vperm.slane %v874_v32, %v1786_v20  ;;  %v861_v39 = vrot.slane %v2033_v33, 4  ;;  %v1113_v49 = vpop.permute.xlu2 %1112  ;;  %v1488_v32 = vld [vmem:[%s2202_s3 + $0x18] sm:$0xff] }
 0x1aa   : > { %v1117_v54 = vperm.slane %v1113_v49, %v1786_v20 }
 0x1ab   : > { %v879_v35 = vrot.slane %v878_v37, 6  ;;  %v862_v40 = vsel %vm260_vm1, %v860_v34, %v861_v39  ;;  %v864_v47 = vsel %vm436_vm7, %v2033_v33, %v861_v39 }
 0x1ac   : > { %v863_v41 = vsel %vm436_vm7, %v857_v56, %v862_v40  ;;  %v1118_v56 = vrot.slane %v1117_v54, 6  ;;  %vm1161_vm7 = vcmask 252928  }
 0x1ad   : > { %v881_v42 = vmul.f32 %v879_v35, %v1868_v4  ;;  %v882_v43 = vmul.f32 %v879_v35, %v1871_v5  ;;  %v2043_v44 = vadd.f32 %v863_v41, %v838_v28 }
 0x1ae   : > { %v1121_v59 = vmul.f32 %v1118_v56, %v1871_v5  ;;  %v1120_v16 = vmul.f32 %v1118_v56, %v1868_v4 }
 0x1af   : > { %887 = vrot.lane.b32.xlu0 %v882_v43, %s1637_s15  ;;  %885 = vrot.lane.b32.xlu2 %v881_v42, %s1637_s15  ;;  %s1646_s15 = smov 52  }
 0x1b0   : > { %1036 = vrot.lane.b32.xlu1 %v1031_v46, %s1645_s16  ;;  %v963_v48 = vpop.permute.xlu0 %962  ;;  %v915_v37 = vpop.permute.xlu1 %914 }
 0x1b1   : > { %v967_v52 = vperm.slane %v963_v48, %v1786_v20  ;;  %v1203_v62 = vpop.permute.xlu2 %1202  ;;  %v918_v60 = vrot.slane %v915_v37, 4 }
 0x1b2   : > { %v1207_v6 = vperm.slane %v1203_v62, %v1786_v20 }
 0x1b3   : > { %v968_v55 = vrot.slane %v967_v52, 6 }
 0x1b4   : > { %v1208_v8 = vrot.slane %v1207_v6, 6 }
 0x1b5   : > { %v970_v57 = vmul.f32 %v968_v55, %v1868_v4  ;;  %v971_v38 = vmul.f32 %v968_v55, %v1871_v5 }
 0x1b6   : > { %v1211_v11 = vmul.f32 %v1208_v8, %v1871_v5  ;;  %v1210_v25 = vmul.f32 %v1208_v8, %v1868_v4 }
 0x1b7   : > { %944 = vrot.lane.b32.xlu0 %v940_v51, %s1643_s10  ;;  %916 = vrot.lane.b32.xlu2 %v911_v50, %s1642_s25  ;;  %s1649_s25 = smov 30   ;;  %v868_v50 = vadd.f32 %v864_v47, %v2028_v27  ;;  %s1654_s10 = smov 25  }
 0x1b8   : > { %1094 = vrot.lane.b32.xlu1 %v1090_v53, %s1646_s15  ;;  %v1053_v61 = vpop.permute.xlu0 %1052 }
 0x1b9   : > { %v1057_v2 = vperm.slane %v1053_v61, %v1786_v20 }
 0x1bb   : > { %v1058_v7 = vrot.slane %v1057_v2, 6 }
 0x1bd   : > { %v1060_v9 = vmul.f32 %v1058_v7, %v1868_v4  ;;  %v1061_v10 = vmul.f32 %v1058_v7, %v1871_v5 }
 0x1bf   : > { %976 = vrot.lane.b32.xlu0 %v971_v38, %s1647_s14  ;;  %974 = vrot.lane.b32.xlu2 %v970_v57, %s1647_s14 }
 0x1c0   : > { %1126 = vrot.lane.b32.xlu1 %v1121_v59, %s1648_s30  ;;  %v1143_v13 = vpop.permute.xlu0 %1142 }
 0x1c1   : > { %v1147_v17 = vperm.slane %v1143_v13, %v1786_v20 }
 0x1c3   : > { %v1148_v19 = vrot.slane %v1147_v17, 6 }
 0x1c5   : > { %v1150_v21 = vmul.f32 %v1148_v19, %v1868_v4  ;;  %v1151_v22 = vmul.f32 %v1148_v19, %v1871_v5 }
 0x1c7   : > { %1034 = vrot.lane.b32.xlu0 %v1030_v1, %s1645_s16  ;;  %1006 = vrot.lane.b32.xlu2 %v1001_v63, %s1644_s13 }
 0x1c8   : > { %1184 = vrot.lane.b32.xlu1 %v1180_v3, %s1649_s25  ;;  %v1233_v23 = vpop.permute.xlu0 %1232 }
 0x1c9   : > { %v1237_v26 = vperm.slane %v1233_v23, %v1786_v20 }
 0x1cb   : > { %v1238_v28 = vrot.slane %v1237_v26, 6 }
 0x1cd   : > { %v1240_v30 = vmul.f32 %v1238_v28, %v1868_v4  ;;  %v1241_v31 = vmul.f32 %v1238_v28, %v1871_v5 }
 0x1cf   : > { %1066 = vrot.lane.b32.xlu0 %v1061_v10, %s1650_s6  ;;  %1064 = vrot.lane.b32.xlu2 %v1060_v9, %s1650_s6 }
 0x1d0   : > { %1216 = vrot.lane.b32.xlu1 %v1211_v11, %s1651_s17 }
 0x1d7   : > { %1124 = vrot.lane.b32.xlu0 %v1120_v16, %s1648_s30  ;;  %1096 = vrot.lane.b32.xlu2 %v1091_v15, %s1646_s15  ;;  %s215_s15 = sand.u32 1, %s1618_s19   ;;  %s1494_s30 = smul.u32 24, %s1706_s22 }
 0x1d8   : > { %1273 = vperm.xlu1 %1563, %v1487_v18   ;;  %s1493_s14 = smul.u32 24, %s215_s15  ;;  %s1373_s22 = scalar_lea.sflag [#allocation3], %s215_s15 }
 0x1d9   : > { %s1384_s26 = scalar_lea.hbm %s2204_s5, %s1494_s30 }
 0x1df   : > { %1156 = vrot.lane.b32.xlu0 %v1151_v22, %s1652_s9  ;;  %1154 = vrot.lane.b32.xlu2 %v1150_v21, %s1652_s9 }
 0x1e7   : > { %1214 = vrot.lane.b32.xlu0 %v1210_v25, %s1651_s17  ;;  %1186 = vrot.lane.b32.xlu2 %v1181_v24, %s1649_s25  ;;  %s217_s25 = scalar_lea.vmem [#allocation2], %s1493_s14 }
 0x1e8   : > { %s1386_s8 = sshll.u32 %s217_s25, 4  ;;  %s1387_s8 = int_to_ptr.vmem [resolvable:$true] %s1386_s8 }
 0x1ef   : > { %1246 = vrot.lane.b32.xlu0 %v1241_v31, %s1653_s7  ;;  %1244 = vrot.lane.b32.xlu2 %v1240_v30, %s1653_s7 }
 0x1f7   : > { %1312 = vperm.xlu2 %1562, %v1488_v32  }
 0x209   : > { %v886_v34 = vpop.permute.xlu2 %885 }
 0x20a   : > { %v889_v54 = vrot.slane %v886_v34, 4 }
 0x211   : > { %v917_v36 = vpop.permute.xlu2 %916 }
 0x212   : > { %v947_v20 = vpop.permute.xlu1 %946  ;;  %v919_v52 = vrot.slane %v917_v36, 4 }
 0x213   : > { %v949_v56 = vrot.slane %v947_v20, 4 }
 0x214   : > { %v923_v55 = vsel %vm921_vm13, %v917_v36, %v919_v52  ;;  %v920_v63 = vsel %vm260_vm1, %v918_v60, %v919_v52 }
 0x215   : > { %v953_v61 = vsel %vm951_vm14, %v947_v20, %v949_v56  ;;  %v922_v13 = vsel %vm921_vm13, %v915_v37, %v920_v63 }
 0x219   : > { %v975_v40 = vpop.permute.xlu2 %974 }
 0x21a   : > { %v2092_v41 = vpop.permute.xlu1 %1004  ;;  %v978_v3 = vrot.slane %v975_v40, 4 }
 0x221   : > { %v888_v35 = vpop.permute.xlu0 %887  ;;  %v1007_v4 = vpop.permute.xlu2 %1006 }
 0x222   : > { %v1037_v43 = vpop.permute.xlu1 %1036  ;;  %v890_v45 = vrot.slane %v888_v35, 4  ;;  %v1009_v6 = vrot.slane %v1007_v4, 4 }
 0x223   : > { %v1039_v11 = vrot.slane %v1037_v43, 4 }
 0x224   : > { %v893_v49 = vsel %vm465_vm8, %v888_v35, %v890_v45  ;;  %v891_v57 = vsel %vm260_vm1, %v889_v54, %v890_v45  ;;  %v1013_v17 = vsel %vm1011_vm0, %v1007_v4, %v1009_v6 }
 0x225   : > { %v897_v53 = vadd.f32 %v893_v49, %v868_v50  ;;  %v892_v27 = vsel %vm465_vm8, %v886_v34, %v891_v57  ;;  %v1043_v28 = vsel %vm1041_vm2, %v1037_v43, %v1039_v11  ;;  %vm1191_vm8 = vcmask 244736  }
 0x226   : > { %v896_v7 = vadd.f32 %v892_v27, %v2043_v44  ;;  %v1008_v44 = vrot.slane %v2092_v41, 4 }
 0x227   : > { %v927_v58 = vadd.f32 %v923_v55, %v897_v53 }
 0x228   : > { %v926_v18 = vadd.f32 %v922_v13, %v896_v7  ;;  %v1010_v26 = vsel %vm260_vm1, %v1008_v44, %v1009_v6 }
 0x229   : > { %v945_v42 = vpop.permute.xlu0 %944  ;;  %v2094_v46 = vpop.permute.xlu2 %1064  ;;  %v957_v1 = vadd.f32 %v953_v61, %v927_v58 }
 0x22a   : > { %v2102_v51 = vpop.permute.xlu1 %1094  ;;  %v948_v59 = vrot.slane %v945_v42, 4  ;;  %v1068_v30 = vrot.slane %v2094_v46, 4 }
 0x22b   : > { %v1098_v47 = vrot.slane %v2102_v51, 4 }
 0x22c   : > { %v950_v8 = vsel %vm260_vm1, %v948_v59, %v949_v56 }
 0x22d   : > { %v952_v15 = vsel %vm951_vm14, %v945_v42, %v950_v8 }
 0x22e   : > { %v956_v25 = vadd.f32 %v952_v15, %v926_v18 }
 0x231   : > { %v977_v5 = vpop.permute.xlu0 %976  ;;  %v1097_v33 = vpop.permute.xlu2 %1096 }
 0x232   : > { %v979_v38 = vrot.slane %v977_v5, 4  ;;  %v1127_v2 = vpop.permute.xlu1 %1126  ;;  %v1099_v20 = vrot.slane %v1097_v33, 4 }
 0x233   : > { %v1129_v52 = vrot.slane %v1127_v2, 4 }
 0x234   : > { %v983_v62 = vsel %vm981_vm15, %v977_v5, %v979_v38  ;;  %v980_v10 = vsel %vm260_vm1, %v978_v3, %v979_v38  ;;  %v1103_v50 = vsel %vm1101_vm5, %v1097_v33, %v1099_v20 }
 0x235   : > { %v987_v9 = vadd.f32 %v983_v62, %v957_v1  ;;  %v982_v22 = vsel %vm981_vm15, %v975_v40, %v980_v10  ;;  %v1012_v40 = vsel %vm1011_vm0, %v2092_v41, %v1010_v26  ;;  %v1100_v41 = vsel %vm260_vm1, %v1098_v47, %v1099_v20 }
 0x236   : > { %v986_v31 = vadd.f32 %v982_v22, %v956_v25  ;;  %v1133_v58 = vsel %vm1131_vm6, %v1127_v2, %v1129_v52  ;;  %v1102_v33 = vsel %vm1101_vm5, %v2102_v51, %v1100_v41  ;;  %v1337_v41 = vld [vmem:[%s2203_s4] sm:$0xff] }
 0x237   : > { %v1017_v23 = vadd.f32 %v1013_v17, %v987_v9 }
 0x238   : > { %v1016_v5 = vadd.f32 %v1012_v40, %v986_v31 }
 0x239   : > { %v1035_v48 = vpop.permute.xlu0 %1034  ;;  %v1155_v24 = vpop.permute.xlu2 %1154  ;;  %v1047_v36 = vadd.f32 %v1043_v28, %v1017_v23 }
 0x23a   : > { %v1038_v19 = vrot.slane %v1035_v48, 4  ;;  %v1185_v37 = vpop.permute.xlu1 %1184 }
 0x23b   : > { %v1188_v7 = vrot.slane %v1185_v37, 4 }
 0x23c   : > { %v1040_v32 = vsel %vm260_vm1, %v1038_v19, %v1039_v11 }
 0x23d   : > { %v1042_v42 = vsel %vm1041_vm2, %v1035_v48, %v1040_v32  ;;  %v1158_v48 = vrot.slane %v1155_v24, 4 }
 0x23e   : > { %v1046_v53 = vadd.f32 %v1042_v42, %v1016_v5 }
 0x241   : > { %v1067_v39 = vpop.permute.xlu0 %1066  ;;  %v1187_v56 = vpop.permute.xlu2 %1186 }
 0x242   : > { %v1069_v21 = vrot.slane %v1067_v39, 4  ;;  %v1217_v59 = vpop.permute.xlu1 %1216  ;;  %v1189_v62 = vrot.slane %v1187_v56, 4 }
 0x243   : > { %v1219_v2 = vrot.slane %v1217_v59, 4 }
 0x244   : > { %v1073_v34 = vsel %vm1071_vm4, %v1067_v39, %v1069_v21  ;;  %v1070_v35 = vsel %vm260_vm1, %v1068_v30, %v1069_v21  ;;  %v1190_v9 = vsel %vm260_vm1, %v1188_v7, %v1189_v62  ;;  %v1193_v10 = vsel %vm1191_vm8, %v1187_v56, %v1189_v62 }
 0x245   : > { %v1077_v4 = vadd.f32 %v1073_v34, %v1047_v36  ;;  %v1072_v49 = vsel %vm1071_vm4, %v2094_v46, %v1070_v35  ;;  %v1223_v19 = vsel %vm1221_vm9, %v1217_v59, %v1219_v2  ;;  %v505_v7 = vperm.slane %v1952_v12, 5 }
 0x246   : > { %v1076_v57 = vadd.f32 %v1072_v49, %v1046_v53 }
 0x247   : > { %v1107_v55 = vadd.f32 %v1103_v50, %v1077_v4 }
 0x248   : > { %v1106_v63 = vadd.f32 %v1102_v33, %v1076_v57  ;;  %v504_v57 = vperm.slane %v1952_v12, 1 }
 0x249   : > { %v1125_v16 = vpop.permute.xlu0 %1124  ;;  %v1137_v27 = vadd.f32 %v1133_v58, %v1107_v55  ;;  %v1245_v51 = vpop.permute.xlu2 %1244  ;;  %v476_v58 = vperm.slane %v1954_v14, 4 }
 0x24a   : > { %v1128_v45 = vrot.slane %v1125_v16, 4  ;;  %v1248_v21 = vrot.slane %v1245_v51, 4 }
 0x24c   : > { %v1130_v38 = vsel %vm260_vm1, %v1128_v45, %v1129_v52 }
 0x24d   : > { %v1132_v60 = vsel %vm1131_vm6, %v1125_v16, %v1130_v38  ;;  %v1192_v16 = vsel %vm1191_vm8, %v1185_v37, %v1190_v9  ;;  %v1274_v37 = vpop.permute.xlu1 %1273  ;;  %v475_v38 = vperm.slane %v1954_v14, 0 }
 0x24e   : > { %v1136_v8 = vadd.f32 %v1132_v60, %v1106_v63  ;;  %v484_v63 = vperm.slane %v476_v58, 0 }
 0x24f   : > { %v483_v62 = vperm.slane %v475_v38, 0 }
 0x251   : > { %v1157_v43 = vpop.permute.xlu0 %1156  ;;  %v1313_v53 = vpop.permute.xlu2 %1312  ;;  %v492_v9 = vmul.f32 %v1861_v0, %v483_v62 }
 0x252   : > { %v1159_v54 = vrot.slane %v1157_v43, 4 }
 0x254   : > { %v1160_v39 = vsel %vm260_vm1, %v1158_v48, %v1159_v54  ;;  %v1163_v46 = vsel %vm1161_vm7, %v1157_v43, %v1159_v54  ;;  %v477_v48 = vperm.slane %v1952_v12, 0 }
 0x255   : > { %v1162_v3 = vsel %vm1161_vm7, %v1155_v24, %v1160_v39  ;;  %v1167_v6 = vadd.f32 %v1163_v46, %v1137_v27  ;;  %v502_v39 = vperm.slane %v1954_v14, 1  ;;  %v503_v46 = vperm.slane %v1954_v14, 5 }
 0x256   : > { %v1166_v11 = vadd.f32 %v1162_v3, %v1136_v8  ;;  %v485_v27 = vperm.slane %v477_v48, 0  ;;  %v493_v14 = vmul.f32 %v1861_v0, %v484_v63 }
 0x257   : > { %v1197_v15 = vadd.f32 %v1193_v10, %v1167_v6  ;;  %v511_v3 = vperm.slane %v503_v46, 1  ;;  %v478_v6 = vperm.slane %v1952_v12, 4 }
 0x258   : > { %v1196_v44 = vadd.f32 %v1192_v16, %v1166_v11  ;;  %v513_v16 = vperm.slane %v505_v7, 1 }
 0x259   : > { %v1215_v61 = vpop.permute.xlu0 %1214  ;;  %v1227_v23 = vadd.f32 %v1223_v19, %v1197_v15  ;;  %v520_v11 = vmul.f32 %v1900_v29, %v511_v3  ;;  %v486_v15 = vperm.slane %v478_v6, 0 }
 0x25a   : > { %v1218_v1 = vrot.slane %v1215_v61, 4 }
 0x25c   : > { %v1220_v13 = vsel %vm260_vm1, %v1218_v1, %v1219_v2  ;;  %v510_v1 = vperm.slane %v502_v39, 1  ;;  %v494_v2 = vmul.f32 %v1861_v0, %v485_v27 }
 0x25d   : > { %v1222_v17 = vsel %vm1221_vm9, %v1215_v61, %v1220_v13  ;;  %v512_v61 = vperm.slane %v504_v57, 1 }
 0x25e   : > { %v1226_v24 = vadd.f32 %v1222_v17, %v1196_v44  ;;  %v519_v10 = vmul.f32 %v1900_v29, %v510_v1  ;;  %v524_v44 = vadd.f32 %v520_v11, %v493_v14 }
 0x25f   : > { %v521_v8 = vmul.f32 %v1900_v29, %v512_v61 }
 0x261   : > { %v1247_v18 = vpop.permute.xlu0 %1246  ;;  %v525_v19 = vadd.f32 %v521_v8, %v494_v2 }
 0x262   : > { %v1249_v22 = vrot.slane %v1247_v18, 4 }
 0x264   : > { %v1250_v25 = vsel %vm260_vm1, %v1248_v21, %v1249_v22  ;;  %v1253_v26 = vsel %vm1251_vm10, %v1247_v18, %v1249_v22  ;;  %vm1288_vm1 = vcmask 203776   ;;  %v523_v21 = vadd.f32 %v519_v10, %v492_v9 }
 0x265   : > { %v1252_v28 = vsel %vm1251_vm10, %v1245_v51, %v1250_v25  ;;  %v1257_v30 = vadd.f32 %v1253_v26, %v1227_v23 }
 0x266   : > { %v1256_v31 = vadd.f32 %v1252_v28, %v1226_v24  ;;  %v495_v28 = vmul.f32 %v1861_v0, %v486_v15 }
 0x267   : > { %v1264_v32 = vperm.slane %v1257_v30, 2  ;;  %v1303_v42 = vperm.slane %v1257_v30, 3  ;;  %v522_v30 = vmul.f32 %v1900_v29, %v513_v16 }
 0x268   : > { %v1263_v34 = vperm.slane %v1256_v31, 6  ;;  %v1262_v36 = vperm.slane %v1256_v31, 2  ;;  %v1302_v45 = vperm.slane %v1256_v31, 7  ;;  %v1301_v47 = vperm.slane %v1256_v31, 3 }
 0x269   : > { %v1270_v20 = vperm.slane %v1264_v32, 2  ;;  %v1309_v49 = vperm.slane %v1303_v42, 3 }
 0x26a   : > { %v1269_v35 = vperm.slane %v1263_v34, 2  ;;  %v1268_v40 = vperm.slane %v1262_v36, 2  ;;  %v1308_v50 = vperm.slane %v1302_v45, 3  ;;  %v1307_v52 = vperm.slane %v1301_v47, 3 }
 0x26b   : > { %v1278_v4 = vmul.f32 %v1274_v37, %v1270_v20  ;;  %v1317_v54 = vmul.f32 %v1313_v53, %v1309_v49 }
 0x26c   : > { %v1277_v43 = vmul.f32 %v1274_v37, %v1269_v35  ;;  %v1276_v5 = vmul.f32 %v1274_v37, %v1268_v40  ;;  %v1316_v55 = vmul.f32 %v1313_v53, %v1308_v50  ;;  %v1315_v56 = vmul.f32 %v1313_v53, %v1307_v52 }
 0x26d   : > { %1286 = vrot.lane.b32.xlu2 %v1278_v4, %s1654_s10  ;;  %v526_v40 = vadd.f32 %v522_v30, %v495_v28 }
 0x26e   : > { %1284 = vrot.lane.b32.xlu1 %v1277_v43, %s1654_s10  ;;  %1282 = vrot.lane.b32.xlu0 %v1276_v5, %s1654_s10 }
 0x275   : > { %1325 = vrot.lane.b32.xlu2 %v1317_v54, %s1654_s10 }
 0x276   : > { %1323 = vrot.lane.b32.xlu1 %v1316_v55, %s1654_s10  ;;  %1321 = vrot.lane.b32.xlu0 %v1315_v56, %s1654_s10  ;;  %s1584_s10 = scalar_lea.hbm %s2204_s5, 48 }
 0x27e   : > { %1340 = vperm.xlu0 %1561, %v1337_v41  }
 0x2c7   : > { %v1287_v60 = vpop.permute.xlu2 %1286 }
 0x2c8   : > { %v1298_v5 = vadd.f32 %v1287_v60, %v526_v40 }
 0x2cf   : > { %v1326_v12 = vpop.permute.xlu2 %1325 }
 0x2d0   : > { %v1336_v0 = vadd.f32 %v1326_v12, %v1298_v5 }
 0x2e0   : > { %v1285_v59 = vpop.permute.xlu1 %1284  ;;  %v1283_v33 = vpop.permute.xlu0 %1282 }
 0x2e1   : > { %v1290_v17 = vsel %vm1288_vm1, %v1285_v59, %v1287_v60  ;;  %v1289_v18 = vsel %vm1288_vm1, %v1283_v33, %v1285_v59  ;;  %v1295_v25 = vadd.f32 %v1283_v33, %v523_v21 }
 0x2e2   : > { %v1297_v24 = vadd.f32 %v1290_v17, %v525_v19  ;;  %v1296_v26 = vadd.f32 %v1289_v18, %v524_v44 }
 0x2e8   : > { %v1322_v13 = vpop.permute.xlu0 %1321  ;;  %v1324_v51 = vpop.permute.xlu1 %1323 }
 0x2e9   : > { %v1328_v22 = vsel %vm1288_vm1, %v1324_v51, %v1326_v12  ;;  %v1327_v23 = vsel %vm1288_vm1, %v1322_v13, %v1324_v51  ;;  %v1333_v32 = vadd.f32 %v1322_v13, %v1295_v25 }
 0x2ea   : > { %v1335_v31 = vadd.f32 %v1328_v22, %v1297_v24  ;;  %v1334_v34 = vadd.f32 %v1327_v23, %v1296_v26 }
 0x2f0   : > { %v1341_v36 = vpop.permute.xlu0 %1340 }
 0x2f1   : > { %v1345_v20 = vadd.f32 %v1341_v36, %v1335_v31  ;;  %v1344_v37 = vadd.f32 %v1341_v36, %v1334_v34  ;;  %v1343_v35 = vadd.f32 %v1341_v36, %v1333_v32  ;;  %v1346_v29 = vadd.f32 %v1341_v36, %v1336_v0 }
 0x2f3   : > { %v1349_v42 = vmax.f32 %v1345_v20, 0.0  ;;  %v1348_v4 = vmax.f32 %v1344_v37, 0.0  ;;  %v1347_v43 = vmax.f32 %v1343_v35, 0.0  ;;  %v1350_v45 = vmax.f32 %v1346_v29, 0.0 }
 0x2f5   : > { %1359 = vrot.lane.b32.xlu0 %v1349_v42, %s1632_s23  ;;  %1357 = vrot.lane.b32.xlu2 %v1348_v4, %s1632_s23 }
 0x2f6   : > { %1355 = vrot.lane.b32.xlu1 %v1347_v43, %s1632_s23 }
 0x2fe   : > { %1361 = vrot.lane.b32.xlu1 %v1350_v45, %s1632_s23  ;;  %s1388_s23 = sshll.u32 %s1384_s26, 4  ;;  %s1389_s23 = int_to_ptr.hbm [resolvable:$true] %s1388_s23 }
 0x2ff   : > { %s1578_s9 = sshra.s32 %s1389_s23, 4  ;;  %s1579_s9 = int_to_ptr.hbm [resolvable:$true] %s1578_s9 }
 0x300   : > { %s1580_s7 = scalar_lea.hbm %s1579_s9, 24  ;;  %p1585_p0 = scmp.lt.s32.totalorder %s1579_s9, %s2204_s5 }
 0x301   : > { %p1581_p11 = scmp.ne.s32.totalorder %s1579_s9, %s1580_s7  ;;  %p1586_p1 = scmp.lt.s32.totalorder %s1584_s10, %s1580_s7 }
 0x303   : > { %p1582_p12 = pnand %p1581_p11, %p1723_p5  ;;  %p1587_p2 = por %p1586_p1, %p1585_p0 }
 0x305   : > { %p1583_p13 = pneg %p1582_p12 }
 0x307   : > { %p1588_p3 = pnand %p1587_p2, %p1583_p13 }
 0x34f   : > { %v1358_v47 = vpop.permute.xlu2 %1357 }
 0x367   : > { %v1360_v49 = vpop.permute.xlu0 %1359 }
 0x368   : > { %v1364_v50 = vsel %vm349_vm3, %v1358_v47, %v1360_v49  ;;  %v1356_v52 = vpop.permute.xlu1 %1355 }
 0x369   : > { %1370 = vst [vmem:[%s217_s25 + $0x8] sm:$0xff] %v1364_v50  ;;  %v1363_v53 = vsel %vm349_vm3, %v1356_v52, %v1358_v47 }
 0x36a   : > { %1369 = vst [vmem:[%s217_s25] sm:$0xff] %v1363_v53 }
 0x370   : > { %v1362_v54 = vpop.permute.xlu1 %1361 }
 0x371   : > { %v1365_v55 = vsel %vm349_vm3, %v1360_v49, %v1362_v54 }
 0x372   : > { %1371 = vst [vmem:[%s217_s25 + $0x10] sm:$0xff] %v1365_v55 }
 0x373   : > { %1591 = shalt.err (!%p1588_p3)
}
 0x374   : > { %1495 = dma.vmem_to_hbm [thread:$0]  (%p1723_p5), %s1387_s8, 384, %s1389_s23, %s1373_s22  }
 0x375 PF: > { %p1501_p4 = scmp.ge.s32.totalorder %s1626_s21, 2  ;;  %s1400_s15 = sand.u32 1, %s1614_s18  }
 0x376   : > { %s1401_s14 = scalar_lea.sflag [#allocation3], %s1400_s15 }
 0x377   : > { %p1498_p7 = pnand %p1501_p4, %p1727_p6 }
 0x379   : > { %p1499_p8 = pneg %p1498_p7 }
 0x37b   : > { %1609 = dma.done.wait (%p1499_p8), %s1401_s14, 384  }
 0x37c   : > { %1611 = vsyncadd (%p1499_p8), %s1401_s14, 4294966912  ;;  %p15_p9 = scmp.ge.s32.totalorder %s1710_s24, 4   ;;  %s2207_s18 = smov %s1618_s19 }
 0x37d   : > { %s2208_s19 = smov %s1622_s20  ;;  %s2209_s20 = smov %s1721_s27 }
 0x37e   : > { %s2210_s21 = smov %s1710_s24  ;;  %17 = sbr.rel (!%p15_p9) target bundleno = 3 (0x3), region = 110 }
 0x383   :  { %1407 = vsyncpa [#allocation3], 1 }
 0x384   :  { %1409 = vsyncpa [#allocation3 + $0x1], 1 }

</bundles_post_ra>
